<compile_context>
chip_gen: v7x
topology: tpu7x:2x2x1
jax: 0.10.0
libtpu: 0.0.40
codegen_flags: <defaults>
</compile_context>

<pallas_src>
import jax
import jax.numpy as jnp
import numpy as np
from jax import lax
from jax.experimental import pallas as pl
from jax.experimental.pallas import tpu as pltpu

K = 7            # Conv1d kernel size
PAD1 = 3         # first conv padding (dilation 1)
PAD2 = 6         # second conv padding
DIL2 = 2         # second conv dilation
NEG_SLOPE = 0.01 # LeakyReLU default slope
HIGH = lax.Precision.HIGHEST   # only used by the fp32 reference


def upsampling_block_kernel(x_ref, skip_ref, m_ref, w1_ref, b1_ref,
                            w2_ref, b2_ref, o_ref):
    # x_ref    : (B_TILE, C_in, L_x)  f32
    # skip_ref : (B_TILE, C_out, L)   f32
    # m_ref    : (L_x, L)             bf16  (linear-interp matrix)
    # w1_ref   : (C_out, K*C_cat)     bf16  (taps flattened along contraction)
    # b1_ref   : (C_out, 1)           f32
    # w2_ref   : (C_out, K*C_out)     bf16
    # b2_ref   : (C_out, 1)           f32
    # o_ref    : (B_TILE, C_out, L)   f32
    B_TILE, _, _ = x_ref.shape
    _, C_out, L = o_ref.shape

    # Lane-index row, reused for all tap-shift edge masks.
    col = lax.broadcasted_iota(jnp.int32, (1, L), 1)

    def stacked_taps(parts, pad, dil):
        """im2col along the contraction axis.

        parts: list of (C_i, L) f32 values (conv input channels, in order).
        Returns (K * sum(C_i), L) f32 where, for tap k, the rows hold
        part[:, t + k*dil - pad] at column t (zero outside [0, L)).
        Shifts use pltpu.roll (XLU) + a lane mask -> no padded scratch copies.
        """
        pieces = []
        for k in range(K):
            d = k * dil - pad
            if d == 0:
                pieces.extend(parts)
                continue
            valid = (col + d >= 0) & (col + d < L)
            for p in parts:
                rolled = pltpu.roll(p, shift=(-d) % L, axis=1)
                pieces.append(jnp.where(valid, rolled, 0.0))
        return jnp.concatenate(pieces, axis=0)

    # ---- per-batch im2col operands, stacked along lanes (N = B_TILE*L) -----
    cols1 = []
    for b in range(B_TILE):
        # 1) linear interpolation as one MXU matmul: (C_in, L_x) @ (L_x, L).
        # TODO(synk): for much larger L_x, replace the dense interp matmul
        # with a 2-tap gather/weighted add (m has only 2 nonzeros per column).
        x_up = jnp.dot(x_ref[b].astype(jnp.bfloat16), m_ref[...],
                       preferred_element_type=jnp.float32)          # (C_in, L)
        # 2)+3a) concat is never materialized: x_up rows and skip rows are
        # placed directly in the weight-matching row order per tap.
        cols1.append(stacked_taps([x_up, skip_ref[b]], PAD1, 1))
    stack1 = jnp.concatenate(cols1, axis=1)            # (K*C_cat, B_TILE*L)

    # ---- 3) Conv1d(k=7, pad=3) as a single matmul + bias + LeakyReLU -------
    h = jnp.dot(w1_ref[...], stack1.astype(jnp.bfloat16),
                preferred_element_type=jnp.float32) + b1_ref[...]
    h = jnp.where(h >= 0, h, NEG_SLOPE * h)            # (C_out, B_TILE*L)

    # ---- 4) Conv1d(k=7, pad=6, dil=2) the same way --------------------------
    cols2 = [stacked_taps([h[:, b * L:(b + 1) * L]], PAD2, DIL2)
             for b in range(B_TILE)]
    stack2 = jnp.concatenate(cols2, axis=1)            # (K*C_out, B_TILE*L)
    y = jnp.dot(w2_ref[...], stack2.astype(jnp.bfloat16),
                preferred_element_type=jnp.float32) + b2_ref[...]
    y = jnp.where(y >= 0, y, NEG_SLOPE * y)            # (C_out, B_TILE*L)

    # Lane-aligned (width-L) stores, one slab per batch element in the block.
    for b in range(B_TILE):
        o_ref[b] = y[:, b * L:(b + 1) * L]


def linear_interp_matrix(l_in, l_out):
    """PyTorch F.interpolate(mode='linear', align_corners=False) as a matrix."""
    i = np.arange(l_out, dtype=np.float64)
    scale = l_in / l_out
    src = np.maximum(scale * (i + 0.5) - 0.5, 0.0)
    i0 = np.minimum(np.floor(src).astype(np.int64), l_in - 1)
    i1 = np.minimum(i0 + 1, l_in - 1)
    w1 = (src - i0).astype(np.float32)
    w0 = 1.0 - w1
    m = np.zeros((l_in, l_out), np.float32)
    cols = np.arange(l_out)
    m[i0, cols] += w0
    m[i1, cols] += w1
    return jnp.asarray(m)


def upsampling_block(x, skip, w1, b1, w2, b2, *, b_tile=None):
    B, C_in, L_x = x.shape
    _, C_out, L = skip.shape
    C_cat = C_in + C_out

    if b_tile is None:
        # Block 2 batch elements per grid step (N = 2*L >= 256 lanes for the
        # v6e MXU) while keeping >= 2 grid steps so v7x's two TensorCores are
        # both used via the "parallel" grid axis.
        b_tile = 2 if (B % 2 == 0 and B >= 4) else 1
    assert B % b_tile == 0, "batch must be divisible by b_tile"

    # Interp matrix and conv weights shipped as bf16 (f32 accumulation in-kernel).
    m = linear_interp_matrix(L_x, L).astype(jnp.bfloat16)
    # (C_out, C_in_conv, K) -> (C_out, K, C_in_conv) -> (C_out, K*C_in_conv),
    # matching the kernel's im2col row order (tap-major, channel-minor).
    w1_f = jnp.transpose(w1, (0, 2, 1)).reshape(C_out, K * C_cat).astype(jnp.bfloat16)
    w2_f = jnp.transpose(w2, (0, 2, 1)).reshape(C_out, K * C_out).astype(jnp.bfloat16)
    b1_c = b1.reshape(C_out, 1).astype(jnp.float32)
    b2_c = b2.reshape(C_out, 1).astype(jnp.float32)

    grid = (B // b_tile,)
    return pl.pallas_call(
        upsampling_block_kernel,
        out_shape=jax.ShapeDtypeStruct((B, C_out, L), jnp.float32),
        grid_spec=pltpu.PrefetchScalarGridSpec(
            num_scalar_prefetch=0,
            grid=grid,
            in_specs=[
                pl.BlockSpec((b_tile, C_in, L_x), lambda g: (g, 0, 0)),
                pl.BlockSpec((b_tile, C_out, L), lambda g: (g, 0, 0)),
                pl.BlockSpec((L_x, L), lambda g: (0, 0)),
                pl.BlockSpec((C_out, K * C_cat), lambda g: (0, 0)),
                pl.BlockSpec((C_out, 1), lambda g: (0, 0)),
                pl.BlockSpec((C_out, K * C_out), lambda g: (0, 0)),
                pl.BlockSpec((C_out, 1), lambda g: (0, 0)),
            ],
            out_specs=pl.BlockSpec((b_tile, C_out, L), lambda g: (g, 0, 0)),
        ),
        compiler_params=pltpu.CompilerParams(
            dimension_semantics=("parallel",)),
    )(x, skip, m, w1_f, b1_c, w2_f, b2_c)


def reference(x, skip, w1, b1, w2, b2):
    """Pure-JAX fp32 reference with the module's exact semantics."""
    _, _, L_x = x.shape
    _, _, L = skip.shape
    m = linear_interp_matrix(L_x, L)
    x_up = jnp.einsum('bcl,lm->bcm', x, m, precision=HIGH)
    cat = jnp.concatenate([x_up, skip], axis=1)
    dn = ('NCH', 'OIH', 'NCH')
    h = lax.conv_general_dilated(cat, w1, (1,), [(PAD1, PAD1)],
                                 rhs_dilation=(1,), dimension_numbers=dn,
                                 precision=HIGH)
    h = h + b1[None, :, None]
    h = jnp.where(h >= 0, h, NEG_SLOPE * h)
    y = lax.conv_general_dilated(h, w2, (1,), [(PAD2, PAD2)],
                                 rhs_dilation=(DIL2,), dimension_numbers=dn,
                                 precision=HIGH)
    y = y + b2[None, :, None]
    return jnp.where(y >= 0, y, NEG_SLOPE * y)


if __name__ == "__main__":
    in_channels, out_channels = 8, 8
    B, L_x, L_skip = 4, 64, 128          # B=4 -> b_tile=2, grid=(2,)
    C_cat = in_channels + out_channels

    key = jax.random.PRNGKey(0)
    k_x, k_s, k_w1, k_b1, k_w2, k_b2 = jax.random.split(key, 6)
    x = jax.random.normal(k_x, (B, in_channels, L_x), jnp.float32)
    skip = jax.random.normal(k_s, (B, out_channels, L_skip), jnp.float32)
    # deterministic synthetic parameters (shapes from nn.Conv1d in __init__)
    w1 = 0.1 * jax.random.normal(k_w1, (out_channels, C_cat, K), jnp.float32)
    b1 = 0.1 * jax.random.normal(k_b1, (out_channels,), jnp.float32)
    w2 = 0.1 * jax.random.normal(k_w2, (out_channels, out_channels, K), jnp.float32)
    b2 = 0.1 * jax.random.normal(k_b2, (out_channels,), jnp.float32)

    out = jax.block_until_ready(upsampling_block(x, skip, w1, b1, w2, b2))
    ref = jax.block_until_ready(reference(x, skip, w1, b1, w2, b2))
    # bf16 matmul inputs (f32 accumulation) vs fp32 reference -> looser tol.
    np.testing.assert_allclose(np.asarray(out), np.asarray(ref),
                               rtol=2e-2, atol=5e-2)
    print("KERNEL_OK")
</pallas_src>

<mosaic_0001>
module attributes {stable_mosaic.version = 11 : i64} {
  func.func @upsampling_block_kernel(%arg0: i32, %arg1: memref<2x8x64xf32, #tpu.memory_space<vmem>>, %arg2: memref<2x8x128xf32, #tpu.memory_space<vmem>>, %arg3: memref<64x128xbf16, #tpu.memory_space<vmem>>, %arg4: memref<8x112xbf16, #tpu.memory_space<vmem>>, %arg5: memref<8x1xf32, #tpu.memory_space<vmem>>, %arg6: memref<8x56xbf16, #tpu.memory_space<vmem>>, %arg7: memref<8x1xf32, #tpu.memory_space<vmem>>, %arg8: memref<2x8x128xf32, #tpu.memory_space<vmem>>) attributes {dimension_semantics = [#tpu.dimension_semantics<parallel>], iteration_bounds = array<i64: 2>, scalar_prefetch = 0 : i64, scratch_operands = 0 : i64, tpu.core_type = #tpu.core_type<tc>, window_params = [{transform_indices = @transform_0, window_bounds = array<i64: 2, 8, 64>}, {transform_indices = @transform_1, window_bounds = array<i64: 2, 8, 128>}, {pipeline_mode = #tpu.pipeline_mode<synchronous>, transform_indices = @transform_2, window_bounds = array<i64: 64, 128>}, {pipeline_mode = #tpu.pipeline_mode<synchronous>, transform_indices = @transform_3, window_bounds = array<i64: 8, 112>}, {pipeline_mode = #tpu.pipeline_mode<synchronous>, transform_indices = @transform_4, window_bounds = array<i64: 8, 1>}, {pipeline_mode = #tpu.pipeline_mode<synchronous>, transform_indices = @transform_5, window_bounds = array<i64: 8, 56>}, {pipeline_mode = #tpu.pipeline_mode<synchronous>, transform_indices = @transform_6, window_bounds = array<i64: 8, 1>}, {transform_indices = @transform_7, window_bounds = array<i64: 2, 8, 128>}]} {
    %0 = tpu.iota {dimensions = array<i32: 1>} : vector<1x128xi32>
    %c0 = arith.constant 0 : index
    %c0_0 = arith.constant 0 : index
    %c0_1 = arith.constant 0 : index
    %1 = vector.load %arg1[%c0, %c0_0, %c0_1] : memref<2x8x64xf32, #tpu.memory_space<vmem>>, vector<1x8x64xf32>
    %2 = vector.shape_cast %1 : vector<1x8x64xf32> to vector<8x64xf32>
    %3 = arith.truncf %2 : vector<8x64xf32> to vector<8x64xbf16>
    %c0_2 = arith.constant 0 : index
    %c0_3 = arith.constant 0 : index
    %4 = vector.load %arg3[%c0_2, %c0_3] : memref<64x128xbf16, #tpu.memory_space<vmem>>, vector<64x128xbf16>
    %cst = arith.constant dense<0.000000e+00> : vector<8x128xf32>
    %5 = tpu.matmul %3, %4, %cst {dimension_numbers = #tpu.dot_dimension_numbers<[1], [0], [0], [1], [0, 0, 1, 1], [], []>} : vector<8x64xbf16>, vector<64x128xbf16>, vector<8x128xf32> -> vector<8x128xf32>
    %c0_4 = arith.constant 0 : index
    %c0_5 = arith.constant 0 : index
    %c0_6 = arith.constant 0 : index
    %6 = vector.load %arg2[%c0_4, %c0_5, %c0_6] : memref<2x8x128xf32, #tpu.memory_space<vmem>>, vector<1x8x128xf32>
    %7 = vector.shape_cast %6 : vector<1x8x128xf32> to vector<8x128xf32>
    %c-3_i32 = arith.constant -3 : i32
    %8 = vector.broadcast %c-3_i32 : i32 to vector<1x128xi32>
    %9 = arith.addi %0, %8 : vector<1x128xi32>
    %c0_i32 = arith.constant 0 : i32
    %10 = vector.broadcast %c0_i32 : i32 to vector<1x128xi32>
    %11 = arith.cmpi sge, %9, %10 : vector<1x128xi32>
    %c-3_i32_7 = arith.constant -3 : i32
    %12 = vector.broadcast %c-3_i32_7 : i32 to vector<1x128xi32>
    %13 = arith.addi %0, %12 : vector<1x128xi32>
    %c128_i32 = arith.constant 128 : i32
    %14 = vector.broadcast %c128_i32 : i32 to vector<1x128xi32>
    %15 = arith.cmpi slt, %13, %14 : vector<1x128xi32>
    %16 = arith.andi %11, %15 : vector<1x128xi1>
    %c3_i32 = arith.constant 3 : i32
    %17 = tpu.dynamic_rotate %5 by %c3_i32 dim 1 : vector<8x128xf32>, i32 -> vector<8x128xf32>
    %cst_8 = arith.constant 0.000000e+00 : f32
    %18 = vector.shape_cast %16 : vector<1x128xi1> to vector<1x128xi1>
    %19 = vector.broadcast %18 : vector<1x128xi1> to vector<8x128xi1>
    %20 = vector.broadcast %cst_8 : f32 to vector<8x128xf32>
    %21 = arith.select %19, %17, %20 : vector<8x128xi1>, vector<8x128xf32>
    %c3_i32_9 = arith.constant 3 : i32
    %22 = tpu.dynamic_rotate %7 by %c3_i32_9 dim 1 : vector<8x128xf32>, i32 -> vector<8x128xf32>
    %cst_10 = arith.constant 0.000000e+00 : f32
    %23 = vector.shape_cast %16 : vector<1x128xi1> to vector<1x128xi1>
    %24 = vector.broadcast %23 : vector<1x128xi1> to vector<8x128xi1>
    %25 = vector.broadcast %cst_10 : f32 to vector<8x128xf32>
    %26 = arith.select %24, %22, %25 : vector<8x128xi1>, vector<8x128xf32>
    %c-2_i32 = arith.constant -2 : i32
    %27 = vector.broadcast %c-2_i32 : i32 to vector<1x128xi32>
    %28 = arith.addi %0, %27 : vector<1x128xi32>
    %c0_i32_11 = arith.constant 0 : i32
    %29 = vector.broadcast %c0_i32_11 : i32 to vector<1x128xi32>
    %30 = arith.cmpi sge, %28, %29 : vector<1x128xi32>
    %c-2_i32_12 = arith.constant -2 : i32
    %31 = vector.broadcast %c-2_i32_12 : i32 to vector<1x128xi32>
    %32 = arith.addi %0, %31 : vector<1x128xi32>
    %c128_i32_13 = arith.constant 128 : i32
    %33 = vector.broadcast %c128_i32_13 : i32 to vector<1x128xi32>
    %34 = arith.cmpi slt, %32, %33 : vector<1x128xi32>
    %35 = arith.andi %30, %34 : vector<1x128xi1>
    %c2_i32 = arith.constant 2 : i32
    %36 = tpu.dynamic_rotate %5 by %c2_i32 dim 1 : vector<8x128xf32>, i32 -> vector<8x128xf32>
    %cst_14 = arith.constant 0.000000e+00 : f32
    %37 = vector.shape_cast %35 : vector<1x128xi1> to vector<1x128xi1>
    %38 = vector.broadcast %37 : vector<1x128xi1> to vector<8x128xi1>
    %39 = vector.broadcast %cst_14 : f32 to vector<8x128xf32>
    %40 = arith.select %38, %36, %39 : vector<8x128xi1>, vector<8x128xf32>
    %c2_i32_15 = arith.constant 2 : i32
    %41 = tpu.dynamic_rotate %7 by %c2_i32_15 dim 1 : vector<8x128xf32>, i32 -> vector<8x128xf32>
    %cst_16 = arith.constant 0.000000e+00 : f32
    %42 = vector.shape_cast %35 : vector<1x128xi1> to vector<1x128xi1>
    %43 = vector.broadcast %42 : vector<1x128xi1> to vector<8x128xi1>
    %44 = vector.broadcast %cst_16 : f32 to vector<8x128xf32>
    %45 = arith.select %43, %41, %44 : vector<8x128xi1>, vector<8x128xf32>
    %c-1_i32 = arith.constant -1 : i32
    %46 = vector.broadcast %c-1_i32 : i32 to vector<1x128xi32>
    %47 = arith.addi %0, %46 : vector<1x128xi32>
    %c0_i32_17 = arith.constant 0 : i32
    %48 = vector.broadcast %c0_i32_17 : i32 to vector<1x128xi32>
    %49 = arith.cmpi sge, %47, %48 : vector<1x128xi32>
    %c-1_i32_18 = arith.constant -1 : i32
    %50 = vector.broadcast %c-1_i32_18 : i32 to vector<1x128xi32>
    %51 = arith.addi %0, %50 : vector<1x128xi32>
    %c128_i32_19 = arith.constant 128 : i32
    %52 = vector.broadcast %c128_i32_19 : i32 to vector<1x128xi32>
    %53 = arith.cmpi slt, %51, %52 : vector<1x128xi32>
    %54 = arith.andi %49, %53 : vector<1x128xi1>
    %c1_i32 = arith.constant 1 : i32
    %55 = tpu.dynamic_rotate %5 by %c1_i32 dim 1 : vector<8x128xf32>, i32 -> vector<8x128xf32>
    %cst_20 = arith.constant 0.000000e+00 : f32
    %56 = vector.shape_cast %54 : vector<1x128xi1> to vector<1x128xi1>
    %57 = vector.broadcast %56 : vector<1x128xi1> to vector<8x128xi1>
    %58 = vector.broadcast %cst_20 : f32 to vector<8x128xf32>
    %59 = arith.select %57, %55, %58 : vector<8x128xi1>, vector<8x128xf32>
    %c1_i32_21 = arith.constant 1 : i32
    %60 = tpu.dynamic_rotate %7 by %c1_i32_21 dim 1 : vector<8x128xf32>, i32 -> vector<8x128xf32>
    %cst_22 = arith.constant 0.000000e+00 : f32
    %61 = vector.shape_cast %54 : vector<1x128xi1> to vector<1x128xi1>
    %62 = vector.broadcast %61 : vector<1x128xi1> to vector<8x128xi1>
    %63 = vector.broadcast %cst_22 : f32 to vector<8x128xf32>
    %64 = arith.select %62, %60, %63 : vector<8x128xi1>, vector<8x128xf32>
    %c1_i32_23 = arith.constant 1 : i32
    %65 = vector.broadcast %c1_i32_23 : i32 to vector<1x128xi32>
    %66 = arith.addi %0, %65 : vector<1x128xi32>
    %c0_i32_24 = arith.constant 0 : i32
    %67 = vector.broadcast %c0_i32_24 : i32 to vector<1x128xi32>
    %68 = arith.cmpi sge, %66, %67 : vector<1x128xi32>
    %c1_i32_25 = arith.constant 1 : i32
    %69 = vector.broadcast %c1_i32_25 : i32 to vector<1x128xi32>
    %70 = arith.addi %0, %69 : vector<1x128xi32>
    %c128_i32_26 = arith.constant 128 : i32
    %71 = vector.broadcast %c128_i32_26 : i32 to vector<1x128xi32>
    %72 = arith.cmpi slt, %70, %71 : vector<1x128xi32>
    %73 = arith.andi %68, %72 : vector<1x128xi1>
    %c127_i32 = arith.constant 127 : i32
    %74 = tpu.dynamic_rotate %5 by %c127_i32 dim 1 : vector<8x128xf32>, i32 -> vector<8x128xf32>
    %cst_27 = arith.constant 0.000000e+00 : f32
    %75 = vector.shape_cast %73 : vector<1x128xi1> to vector<1x128xi1>
    %76 = vector.broadcast %75 : vector<1x128xi1> to vector<8x128xi1>
    %77 = vector.broadcast %cst_27 : f32 to vector<8x128xf32>
    %78 = arith.select %76, %74, %77 : vector<8x128xi1>, vector<8x128xf32>
    %c127_i32_28 = arith.constant 127 : i32
    %79 = tpu.dynamic_rotate %7 by %c127_i32_28 dim 1 : vector<8x128xf32>, i32 -> vector<8x128xf32>
    %cst_29 = arith.constant 0.000000e+00 : f32
    %80 = vector.shape_cast %73 : vector<1x128xi1> to vector<1x128xi1>
    %81 = vector.broadcast %80 : vector<1x128xi1> to vector<8x128xi1>
    %82 = vector.broadcast %cst_29 : f32 to vector<8x128xf32>
    %83 = arith.select %81, %79, %82 : vector<8x128xi1>, vector<8x128xf32>
    %c2_i32_30 = arith.constant 2 : i32
    %84 = vector.broadcast %c2_i32_30 : i32 to vector<1x128xi32>
    %85 = arith.addi %0, %84 : vector<1x128xi32>
    %c0_i32_31 = arith.constant 0 : i32
    %86 = vector.broadcast %c0_i32_31 : i32 to vector<1x128xi32>
    %87 = arith.cmpi sge, %85, %86 : vector<1x128xi32>
    %c2_i32_32 = arith.constant 2 : i32
    %88 = vector.broadcast %c2_i32_32 : i32 to vector<1x128xi32>
    %89 = arith.addi %0, %88 : vector<1x128xi32>
    %c128_i32_33 = arith.constant 128 : i32
    %90 = vector.broadcast %c128_i32_33 : i32 to vector<1x128xi32>
    %91 = arith.cmpi slt, %89, %90 : vector<1x128xi32>
    %92 = arith.andi %87, %91 : vector<1x128xi1>
    %c126_i32 = arith.constant 126 : i32
    %93 = tpu.dynamic_rotate %5 by %c126_i32 dim 1 : vector<8x128xf32>, i32 -> vector<8x128xf32>
    %cst_34 = arith.constant 0.000000e+00 : f32
    %94 = vector.shape_cast %92 : vector<1x128xi1> to vector<1x128xi1>
    %95 = vector.broadcast %94 : vector<1x128xi1> to vector<8x128xi1>
    %96 = vector.broadcast %cst_34 : f32 to vector<8x128xf32>
    %97 = arith.select %95, %93, %96 : vector<8x128xi1>, vector<8x128xf32>
    %c126_i32_35 = arith.constant 126 : i32
    %98 = tpu.dynamic_rotate %7 by %c126_i32_35 dim 1 : vector<8x128xf32>, i32 -> vector<8x128xf32>
    %cst_36 = arith.constant 0.000000e+00 : f32
    %99 = vector.shape_cast %92 : vector<1x128xi1> to vector<1x128xi1>
    %100 = vector.broadcast %99 : vector<1x128xi1> to vector<8x128xi1>
    %101 = vector.broadcast %cst_36 : f32 to vector<8x128xf32>
    %102 = arith.select %100, %98, %101 : vector<8x128xi1>, vector<8x128xf32>
    %c3_i32_37 = arith.constant 3 : i32
    %103 = vector.broadcast %c3_i32_37 : i32 to vector<1x128xi32>
    %104 = arith.addi %0, %103 : vector<1x128xi32>
    %c0_i32_38 = arith.constant 0 : i32
    %105 = vector.broadcast %c0_i32_38 : i32 to vector<1x128xi32>
    %106 = arith.cmpi sge, %104, %105 : vector<1x128xi32>
    %c3_i32_39 = arith.constant 3 : i32
    %107 = vector.broadcast %c3_i32_39 : i32 to vector<1x128xi32>
    %108 = arith.addi %0, %107 : vector<1x128xi32>
    %c128_i32_40 = arith.constant 128 : i32
    %109 = vector.broadcast %c128_i32_40 : i32 to vector<1x128xi32>
    %110 = arith.cmpi slt, %108, %109 : vector<1x128xi32>
    %111 = arith.andi %106, %110 : vector<1x128xi1>
    %c125_i32 = arith.constant 125 : i32
    %112 = tpu.dynamic_rotate %5 by %c125_i32 dim 1 : vector<8x128xf32>, i32 -> vector<8x128xf32>
    %cst_41 = arith.constant 0.000000e+00 : f32
    %113 = vector.shape_cast %111 : vector<1x128xi1> to vector<1x128xi1>
    %114 = vector.broadcast %113 : vector<1x128xi1> to vector<8x128xi1>
    %115 = vector.broadcast %cst_41 : f32 to vector<8x128xf32>
    %116 = arith.select %114, %112, %115 : vector<8x128xi1>, vector<8x128xf32>
    %c125_i32_42 = arith.constant 125 : i32
    %117 = tpu.dynamic_rotate %7 by %c125_i32_42 dim 1 : vector<8x128xf32>, i32 -> vector<8x128xf32>
    %cst_43 = arith.constant 0.000000e+00 : f32
    %118 = vector.shape_cast %111 : vector<1x128xi1> to vector<1x128xi1>
    %119 = vector.broadcast %118 : vector<1x128xi1> to vector<8x128xi1>
    %120 = vector.broadcast %cst_43 : f32 to vector<8x128xf32>
    %121 = arith.select %119, %117, %120 : vector<8x128xi1>, vector<8x128xf32>
    %122 = tpu.concatenate %21, %26, %40, %45, %59, %64, %5, %7, %78, %83, %97, %102, %116, %121 in 0 : vector<8x128xf32>, vector<8x128xf32>, vector<8x128xf32>, vector<8x128xf32>, vector<8x128xf32>, vector<8x128xf32>, vector<8x128xf32>, vector<8x128xf32>, vector<8x128xf32>, vector<8x128xf32>, vector<8x128xf32>, vector<8x128xf32>, vector<8x128xf32>, vector<8x128xf32> -> vector<112x128xf32>
    %c1 = arith.constant 1 : index
    %c0_44 = arith.constant 0 : index
    %c0_45 = arith.constant 0 : index
    %123 = vector.load %arg1[%c1, %c0_44, %c0_45] : memref<2x8x64xf32, #tpu.memory_space<vmem>>, vector<1x8x64xf32>
    %124 = vector.shape_cast %123 : vector<1x8x64xf32> to vector<8x64xf32>
    %125 = arith.truncf %124 : vector<8x64xf32> to vector<8x64xbf16>
    %c0_46 = arith.constant 0 : index
    %c0_47 = arith.constant 0 : index
    %126 = vector.load %arg3[%c0_46, %c0_47] : memref<64x128xbf16, #tpu.memory_space<vmem>>, vector<64x128xbf16>
    %cst_48 = arith.constant dense<0.000000e+00> : vector<8x128xf32>
    %127 = tpu.matmul %125, %126, %cst_48 {dimension_numbers = #tpu.dot_dimension_numbers<[1], [0], [0], [1], [0, 0, 1, 1], [], []>} : vector<8x64xbf16>, vector<64x128xbf16>, vector<8x128xf32> -> vector<8x128xf32>
    %c1_49 = arith.constant 1 : index
    %c0_50 = arith.constant 0 : index
    %c0_51 = arith.constant 0 : index
    %128 = vector.load %arg2[%c1_49, %c0_50, %c0_51] : memref<2x8x128xf32, #tpu.memory_space<vmem>>, vector<1x8x128xf32>
    %129 = vector.shape_cast %128 : vector<1x8x128xf32> to vector<8x128xf32>
    %c-3_i32_52 = arith.constant -3 : i32
    %130 = vector.broadcast %c-3_i32_52 : i32 to vector<1x128xi32>
    %131 = arith.addi %0, %130 : vector<1x128xi32>
    %c0_i32_53 = arith.constant 0 : i32
    %132 = vector.broadcast %c0_i32_53 : i32 to vector<1x128xi32>
    %133 = arith.cmpi sge, %131, %132 : vector<1x128xi32>
    %c-3_i32_54 = arith.constant -3 : i32
    %134 = vector.broadcast %c-3_i32_54 : i32 to vector<1x128xi32>
    %135 = arith.addi %0, %134 : vector<1x128xi32>
    %c128_i32_55 = arith.constant 128 : i32
    %136 = vector.broadcast %c128_i32_55 : i32 to vector<1x128xi32>
    %137 = arith.cmpi slt, %135, %136 : vector<1x128xi32>
    %138 = arith.andi %133, %137 : vector<1x128xi1>
    %c3_i32_56 = arith.constant 3 : i32
    %139 = tpu.dynamic_rotate %127 by %c3_i32_56 dim 1 : vector<8x128xf32>, i32 -> vector<8x128xf32>
    %cst_57 = arith.constant 0.000000e+00 : f32
    %140 = vector.shape_cast %138 : vector<1x128xi1> to vector<1x128xi1>
    %141 = vector.broadcast %140 : vector<1x128xi1> to vector<8x128xi1>
    %142 = vector.broadcast %cst_57 : f32 to vector<8x128xf32>
    %143 = arith.select %141, %139, %142 : vector<8x128xi1>, vector<8x128xf32>
    %c3_i32_58 = arith.constant 3 : i32
    %144 = tpu.dynamic_rotate %129 by %c3_i32_58 dim 1 : vector<8x128xf32>, i32 -> vector<8x128xf32>
    %cst_59 = arith.constant 0.000000e+00 : f32
    %145 = vector.shape_cast %138 : vector<1x128xi1> to vector<1x128xi1>
    %146 = vector.broadcast %145 : vector<1x128xi1> to vector<8x128xi1>
    %147 = vector.broadcast %cst_59 : f32 to vector<8x128xf32>
    %148 = arith.select %146, %144, %147 : vector<8x128xi1>, vector<8x128xf32>
    %c-2_i32_60 = arith.constant -2 : i32
    %149 = vector.broadcast %c-2_i32_60 : i32 to vector<1x128xi32>
    %150 = arith.addi %0, %149 : vector<1x128xi32>
    %c0_i32_61 = arith.constant 0 : i32
    %151 = vector.broadcast %c0_i32_61 : i32 to vector<1x128xi32>
    %152 = arith.cmpi sge, %150, %151 : vector<1x128xi32>
    %c-2_i32_62 = arith.constant -2 : i32
    %153 = vector.broadcast %c-2_i32_62 : i32 to vector<1x128xi32>
    %154 = arith.addi %0, %153 : vector<1x128xi32>
    %c128_i32_63 = arith.constant 128 : i32
    %155 = vector.broadcast %c128_i32_63 : i32 to vector<1x128xi32>
    %156 = arith.cmpi slt, %154, %155 : vector<1x128xi32>
    %157 = arith.andi %152, %156 : vector<1x128xi1>
    %c2_i32_64 = arith.constant 2 : i32
    %158 = tpu.dynamic_rotate %127 by %c2_i32_64 dim 1 : vector<8x128xf32>, i32 -> vector<8x128xf32>
    %cst_65 = arith.constant 0.000000e+00 : f32
    %159 = vector.shape_cast %157 : vector<1x128xi1> to vector<1x128xi1>
    %160 = vector.broadcast %159 : vector<1x128xi1> to vector<8x128xi1>
    %161 = vector.broadcast %cst_65 : f32 to vector<8x128xf32>
    %162 = arith.select %160, %158, %161 : vector<8x128xi1>, vector<8x128xf32>
    %c2_i32_66 = arith.constant 2 : i32
    %163 = tpu.dynamic_rotate %129 by %c2_i32_66 dim 1 : vector<8x128xf32>, i32 -> vector<8x128xf32>
    %cst_67 = arith.constant 0.000000e+00 : f32
    %164 = vector.shape_cast %157 : vector<1x128xi1> to vector<1x128xi1>
    %165 = vector.broadcast %164 : vector<1x128xi1> to vector<8x128xi1>
    %166 = vector.broadcast %cst_67 : f32 to vector<8x128xf32>
    %167 = arith.select %165, %163, %166 : vector<8x128xi1>, vector<8x128xf32>
    %c-1_i32_68 = arith.constant -1 : i32
    %168 = vector.broadcast %c-1_i32_68 : i32 to vector<1x128xi32>
    %169 = arith.addi %0, %168 : vector<1x128xi32>
    %c0_i32_69 = arith.constant 0 : i32
    %170 = vector.broadcast %c0_i32_69 : i32 to vector<1x128xi32>
    %171 = arith.cmpi sge, %169, %170 : vector<1x128xi32>
    %c-1_i32_70 = arith.constant -1 : i32
    %172 = vector.broadcast %c-1_i32_70 : i32 to vector<1x128xi32>
    %173 = arith.addi %0, %172 : vector<1x128xi32>
    %c128_i32_71 = arith.constant 128 : i32
    %174 = vector.broadcast %c128_i32_71 : i32 to vector<1x128xi32>
    %175 = arith.cmpi slt, %173, %174 : vector<1x128xi32>
    %176 = arith.andi %171, %175 : vector<1x128xi1>
    %c1_i32_72 = arith.constant 1 : i32
    %177 = tpu.dynamic_rotate %127 by %c1_i32_72 dim 1 : vector<8x128xf32>, i32 -> vector<8x128xf32>
    %cst_73 = arith.constant 0.000000e+00 : f32
    %178 = vector.shape_cast %176 : vector<1x128xi1> to vector<1x128xi1>
    %179 = vector.broadcast %178 : vector<1x128xi1> to vector<8x128xi1>
    %180 = vector.broadcast %cst_73 : f32 to vector<8x128xf32>
    %181 = arith.select %179, %177, %180 : vector<8x128xi1>, vector<8x128xf32>
    %c1_i32_74 = arith.constant 1 : i32
    %182 = tpu.dynamic_rotate %129 by %c1_i32_74 dim 1 : vector<8x128xf32>, i32 -> vector<8x128xf32>
    %cst_75 = arith.constant 0.000000e+00 : f32
    %183 = vector.shape_cast %176 : vector<1x128xi1> to vector<1x128xi1>
    %184 = vector.broadcast %183 : vector<1x128xi1> to vector<8x128xi1>
    %185 = vector.broadcast %cst_75 : f32 to vector<8x128xf32>
    %186 = arith.select %184, %182, %185 : vector<8x128xi1>, vector<8x128xf32>
    %c1_i32_76 = arith.constant 1 : i32
    %187 = vector.broadcast %c1_i32_76 : i32 to vector<1x128xi32>
    %188 = arith.addi %0, %187 : vector<1x128xi32>
    %c0_i32_77 = arith.constant 0 : i32
    %189 = vector.broadcast %c0_i32_77 : i32 to vector<1x128xi32>
    %190 = arith.cmpi sge, %188, %189 : vector<1x128xi32>
    %c1_i32_78 = arith.constant 1 : i32
    %191 = vector.broadcast %c1_i32_78 : i32 to vector<1x128xi32>
    %192 = arith.addi %0, %191 : vector<1x128xi32>
    %c128_i32_79 = arith.constant 128 : i32
    %193 = vector.broadcast %c128_i32_79 : i32 to vector<1x128xi32>
    %194 = arith.cmpi slt, %192, %193 : vector<1x128xi32>
    %195 = arith.andi %190, %194 : vector<1x128xi1>
    %c127_i32_80 = arith.constant 127 : i32
    %196 = tpu.dynamic_rotate %127 by %c127_i32_80 dim 1 : vector<8x128xf32>, i32 -> vector<8x128xf32>
    %cst_81 = arith.constant 0.000000e+00 : f32
    %197 = vector.shape_cast %195 : vector<1x128xi1> to vector<1x128xi1>
    %198 = vector.broadcast %197 : vector<1x128xi1> to vector<8x128xi1>
    %199 = vector.broadcast %cst_81 : f32 to vector<8x128xf32>
    %200 = arith.select %198, %196, %199 : vector<8x128xi1>, vector<8x128xf32>
    %c127_i32_82 = arith.constant 127 : i32
    %201 = tpu.dynamic_rotate %129 by %c127_i32_82 dim 1 : vector<8x128xf32>, i32 -> vector<8x128xf32>
    %cst_83 = arith.constant 0.000000e+00 : f32
    %202 = vector.shape_cast %195 : vector<1x128xi1> to vector<1x128xi1>
    %203 = vector.broadcast %202 : vector<1x128xi1> to vector<8x128xi1>
    %204 = vector.broadcast %cst_83 : f32 to vector<8x128xf32>
    %205 = arith.select %203, %201, %204 : vector<8x128xi1>, vector<8x128xf32>
    %c2_i32_84 = arith.constant 2 : i32
    %206 = vector.broadcast %c2_i32_84 : i32 to vector<1x128xi32>
    %207 = arith.addi %0, %206 : vector<1x128xi32>
    %c0_i32_85 = arith.constant 0 : i32
    %208 = vector.broadcast %c0_i32_85 : i32 to vector<1x128xi32>
    %209 = arith.cmpi sge, %207, %208 : vector<1x128xi32>
    %c2_i32_86 = arith.constant 2 : i32
    %210 = vector.broadcast %c2_i32_86 : i32 to vector<1x128xi32>
    %211 = arith.addi %0, %210 : vector<1x128xi32>
    %c128_i32_87 = arith.constant 128 : i32
    %212 = vector.broadcast %c128_i32_87 : i32 to vector<1x128xi32>
    %213 = arith.cmpi slt, %211, %212 : vector<1x128xi32>
    %214 = arith.andi %209, %213 : vector<1x128xi1>
    %c126_i32_88 = arith.constant 126 : i32
    %215 = tpu.dynamic_rotate %127 by %c126_i32_88 dim 1 : vector<8x128xf32>, i32 -> vector<8x128xf32>
    %cst_89 = arith.constant 0.000000e+00 : f32
    %216 = vector.shape_cast %214 : vector<1x128xi1> to vector<1x128xi1>
    %217 = vector.broadcast %216 : vector<1x128xi1> to vector<8x128xi1>
    %218 = vector.broadcast %cst_89 : f32 to vector<8x128xf32>
    %219 = arith.select %217, %215, %218 : vector<8x128xi1>, vector<8x128xf32>
    %c126_i32_90 = arith.constant 126 : i32
    %220 = tpu.dynamic_rotate %129 by %c126_i32_90 dim 1 : vector<8x128xf32>, i32 -> vector<8x128xf32>
    %cst_91 = arith.constant 0.000000e+00 : f32
    %221 = vector.shape_cast %214 : vector<1x128xi1> to vector<1x128xi1>
    %222 = vector.broadcast %221 : vector<1x128xi1> to vector<8x128xi1>
    %223 = vector.broadcast %cst_91 : f32 to vector<8x128xf32>
    %224 = arith.select %222, %220, %223 : vector<8x128xi1>, vector<8x128xf32>
    %c3_i32_92 = arith.constant 3 : i32
    %225 = vector.broadcast %c3_i32_92 : i32 to vector<1x128xi32>
    %226 = arith.addi %0, %225 : vector<1x128xi32>
    %c0_i32_93 = arith.constant 0 : i32
    %227 = vector.broadcast %c0_i32_93 : i32 to vector<1x128xi32>
    %228 = arith.cmpi sge, %226, %227 : vector<1x128xi32>
    %c3_i32_94 = arith.constant 3 : i32
    %229 = vector.broadcast %c3_i32_94 : i32 to vector<1x128xi32>
    %230 = arith.addi %0, %229 : vector<1x128xi32>
    %c128_i32_95 = arith.constant 128 : i32
    %231 = vector.broadcast %c128_i32_95 : i32 to vector<1x128xi32>
    %232 = arith.cmpi slt, %230, %231 : vector<1x128xi32>
    %233 = arith.andi %228, %232 : vector<1x128xi1>
    %c125_i32_96 = arith.constant 125 : i32
    %234 = tpu.dynamic_rotate %127 by %c125_i32_96 dim 1 : vector<8x128xf32>, i32 -> vector<8x128xf32>
    %cst_97 = arith.constant 0.000000e+00 : f32
    %235 = vector.shape_cast %233 : vector<1x128xi1> to vector<1x128xi1>
    %236 = vector.broadcast %235 : vector<1x128xi1> to vector<8x128xi1>
    %237 = vector.broadcast %cst_97 : f32 to vector<8x128xf32>
    %238 = arith.select %236, %234, %237 : vector<8x128xi1>, vector<8x128xf32>
    %c125_i32_98 = arith.constant 125 : i32
    %239 = tpu.dynamic_rotate %129 by %c125_i32_98 dim 1 : vector<8x128xf32>, i32 -> vector<8x128xf32>
    %cst_99 = arith.constant 0.000000e+00 : f32
    %240 = vector.shape_cast %233 : vector<1x128xi1> to vector<1x128xi1>
    %241 = vector.broadcast %240 : vector<1x128xi1> to vector<8x128xi1>
    %242 = vector.broadcast %cst_99 : f32 to vector<8x128xf32>
    %243 = arith.select %241, %239, %242 : vector<8x128xi1>, vector<8x128xf32>
    %244 = tpu.concatenate %143, %148, %162, %167, %181, %186, %127, %129, %200, %205, %219, %224, %238, %243 in 0 : vector<8x128xf32>, vector<8x128xf32>, vector<8x128xf32>, vector<8x128xf32>, vector<8x128xf32>, vector<8x128xf32>, vector<8x128xf32>, vector<8x128xf32>, vector<8x128xf32>, vector<8x128xf32>, vector<8x128xf32>, vector<8x128xf32>, vector<8x128xf32>, vector<8x128xf32> -> vector<112x128xf32>
    %245 = tpu.concatenate %122, %244 in 1 : vector<112x128xf32>, vector<112x128xf32> -> vector<112x256xf32>
    %c0_100 = arith.constant 0 : index
    %c0_101 = arith.constant 0 : index
    %246 = vector.load %arg4[%c0_100, %c0_101] : memref<8x112xbf16, #tpu.memory_space<vmem>>, vector<8x112xbf16>
    %247 = arith.truncf %245 : vector<112x256xf32> to vector<112x256xbf16>
    %cst_102 = arith.constant dense<0.000000e+00> : vector<8x256xf32>
    %248 = tpu.matmul %246, %247, %cst_102 {dimension_numbers = #tpu.dot_dimension_numbers<[1], [0], [0], [1], [0, 0, 1, 1], [], []>} : vector<8x112xbf16>, vector<112x256xbf16>, vector<8x256xf32> -> vector<8x256xf32>
    %c0_103 = arith.constant 0 : index
    %c0_104 = arith.constant 0 : index
    %249 = vector.load %arg5[%c0_103, %c0_104] : memref<8x1xf32, #tpu.memory_space<vmem>>, vector<8x1xf32>
    %250 = vector.broadcast %249 : vector<8x1xf32> to vector<8x256xf32>
    %251 = arith.addf %248, %250 : vector<8x256xf32>
    %cst_105 = arith.constant 0.000000e+00 : f32
    %252 = vector.broadcast %cst_105 : f32 to vector<8x256xf32>
    %253 = arith.cmpf oge, %251, %252 : vector<8x256xf32>
    %cst_106 = arith.constant 0.00999999977 : f32
    %254 = vector.broadcast %cst_106 : f32 to vector<8x256xf32>
    %255 = arith.mulf %254, %251 : vector<8x256xf32>
    %256 = arith.select %253, %251, %255 : vector<8x256xi1>, vector<8x256xf32>
    %257 = vector.extract_strided_slice %256 {offsets = [0, 0], sizes = [8, 128], strides = [1, 1]} : vector<8x256xf32> to vector<8x128xf32>
    %c-6_i32 = arith.constant -6 : i32
    %258 = vector.broadcast %c-6_i32 : i32 to vector<1x128xi32>
    %259 = arith.addi %0, %258 : vector<1x128xi32>
    %c0_i32_107 = arith.constant 0 : i32
    %260 = vector.broadcast %c0_i32_107 : i32 to vector<1x128xi32>
    %261 = arith.cmpi sge, %259, %260 : vector<1x128xi32>
    %c-6_i32_108 = arith.constant -6 : i32
    %262 = vector.broadcast %c-6_i32_108 : i32 to vector<1x128xi32>
    %263 = arith.addi %0, %262 : vector<1x128xi32>
    %c128_i32_109 = arith.constant 128 : i32
    %264 = vector.broadcast %c128_i32_109 : i32 to vector<1x128xi32>
    %265 = arith.cmpi slt, %263, %264 : vector<1x128xi32>
    %266 = arith.andi %261, %265 : vector<1x128xi1>
    %c6_i32 = arith.constant 6 : i32
    %267 = tpu.dynamic_rotate %257 by %c6_i32 dim 1 : vector<8x128xf32>, i32 -> vector<8x128xf32>
    %cst_110 = arith.constant 0.000000e+00 : f32
    %268 = vector.shape_cast %266 : vector<1x128xi1> to vector<1x128xi1>
    %269 = vector.broadcast %268 : vector<1x128xi1> to vector<8x128xi1>
    %270 = vector.broadcast %cst_110 : f32 to vector<8x128xf32>
    %271 = arith.select %269, %267, %270 : vector<8x128xi1>, vector<8x128xf32>
    %c-4_i32 = arith.constant -4 : i32
    %272 = vector.broadcast %c-4_i32 : i32 to vector<1x128xi32>
    %273 = arith.addi %0, %272 : vector<1x128xi32>
    %c0_i32_111 = arith.constant 0 : i32
    %274 = vector.broadcast %c0_i32_111 : i32 to vector<1x128xi32>
    %275 = arith.cmpi sge, %273, %274 : vector<1x128xi32>
    %c-4_i32_112 = arith.constant -4 : i32
    %276 = vector.broadcast %c-4_i32_112 : i32 to vector<1x128xi32>
    %277 = arith.addi %0, %276 : vector<1x128xi32>
    %c128_i32_113 = arith.constant 128 : i32
    %278 = vector.broadcast %c128_i32_113 : i32 to vector<1x128xi32>
    %279 = arith.cmpi slt, %277, %278 : vector<1x128xi32>
    %280 = arith.andi %275, %279 : vector<1x128xi1>
    %c4_i32 = arith.constant 4 : i32
    %281 = tpu.dynamic_rotate %257 by %c4_i32 dim 1 : vector<8x128xf32>, i32 -> vector<8x128xf32>
    %cst_114 = arith.constant 0.000000e+00 : f32
    %282 = vector.shape_cast %280 : vector<1x128xi1> to vector<1x128xi1>
    %283 = vector.broadcast %282 : vector<1x128xi1> to vector<8x128xi1>
    %284 = vector.broadcast %cst_114 : f32 to vector<8x128xf32>
    %285 = arith.select %283, %281, %284 : vector<8x128xi1>, vector<8x128xf32>
    %c-2_i32_115 = arith.constant -2 : i32
    %286 = vector.broadcast %c-2_i32_115 : i32 to vector<1x128xi32>
    %287 = arith.addi %0, %286 : vector<1x128xi32>
    %c0_i32_116 = arith.constant 0 : i32
    %288 = vector.broadcast %c0_i32_116 : i32 to vector<1x128xi32>
    %289 = arith.cmpi sge, %287, %288 : vector<1x128xi32>
    %c-2_i32_117 = arith.constant -2 : i32
    %290 = vector.broadcast %c-2_i32_117 : i32 to vector<1x128xi32>
    %291 = arith.addi %0, %290 : vector<1x128xi32>
    %c128_i32_118 = arith.constant 128 : i32
    %292 = vector.broadcast %c128_i32_118 : i32 to vector<1x128xi32>
    %293 = arith.cmpi slt, %291, %292 : vector<1x128xi32>
    %294 = arith.andi %289, %293 : vector<1x128xi1>
    %c2_i32_119 = arith.constant 2 : i32
    %295 = tpu.dynamic_rotate %257 by %c2_i32_119 dim 1 : vector<8x128xf32>, i32 -> vector<8x128xf32>
    %cst_120 = arith.constant 0.000000e+00 : f32
    %296 = vector.shape_cast %294 : vector<1x128xi1> to vector<1x128xi1>
    %297 = vector.broadcast %296 : vector<1x128xi1> to vector<8x128xi1>
    %298 = vector.broadcast %cst_120 : f32 to vector<8x128xf32>
    %299 = arith.select %297, %295, %298 : vector<8x128xi1>, vector<8x128xf32>
    %c2_i32_121 = arith.constant 2 : i32
    %300 = vector.broadcast %c2_i32_121 : i32 to vector<1x128xi32>
    %301 = arith.addi %0, %300 : vector<1x128xi32>
    %c0_i32_122 = arith.constant 0 : i32
    %302 = vector.broadcast %c0_i32_122 : i32 to vector<1x128xi32>
    %303 = arith.cmpi sge, %301, %302 : vector<1x128xi32>
    %c2_i32_123 = arith.constant 2 : i32
    %304 = vector.broadcast %c2_i32_123 : i32 to vector<1x128xi32>
    %305 = arith.addi %0, %304 : vector<1x128xi32>
    %c128_i32_124 = arith.constant 128 : i32
    %306 = vector.broadcast %c128_i32_124 : i32 to vector<1x128xi32>
    %307 = arith.cmpi slt, %305, %306 : vector<1x128xi32>
    %308 = arith.andi %303, %307 : vector<1x128xi1>
    %c126_i32_125 = arith.constant 126 : i32
    %309 = tpu.dynamic_rotate %257 by %c126_i32_125 dim 1 : vector<8x128xf32>, i32 -> vector<8x128xf32>
    %cst_126 = arith.constant 0.000000e+00 : f32
    %310 = vector.shape_cast %308 : vector<1x128xi1> to vector<1x128xi1>
    %311 = vector.broadcast %310 : vector<1x128xi1> to vector<8x128xi1>
    %312 = vector.broadcast %cst_126 : f32 to vector<8x128xf32>
    %313 = arith.select %311, %309, %312 : vector<8x128xi1>, vector<8x128xf32>
    %c4_i32_127 = arith.constant 4 : i32
    %314 = vector.broadcast %c4_i32_127 : i32 to vector<1x128xi32>
    %315 = arith.addi %0, %314 : vector<1x128xi32>
    %c0_i32_128 = arith.constant 0 : i32
    %316 = vector.broadcast %c0_i32_128 : i32 to vector<1x128xi32>
    %317 = arith.cmpi sge, %315, %316 : vector<1x128xi32>
    %c4_i32_129 = arith.constant 4 : i32
    %318 = vector.broadcast %c4_i32_129 : i32 to vector<1x128xi32>
    %319 = arith.addi %0, %318 : vector<1x128xi32>
    %c128_i32_130 = arith.constant 128 : i32
    %320 = vector.broadcast %c128_i32_130 : i32 to vector<1x128xi32>
    %321 = arith.cmpi slt, %319, %320 : vector<1x128xi32>
    %322 = arith.andi %317, %321 : vector<1x128xi1>
    %c124_i32 = arith.constant 124 : i32
    %323 = tpu.dynamic_rotate %257 by %c124_i32 dim 1 : vector<8x128xf32>, i32 -> vector<8x128xf32>
    %cst_131 = arith.constant 0.000000e+00 : f32
    %324 = vector.shape_cast %322 : vector<1x128xi1> to vector<1x128xi1>
    %325 = vector.broadcast %324 : vector<1x128xi1> to vector<8x128xi1>
    %326 = vector.broadcast %cst_131 : f32 to vector<8x128xf32>
    %327 = arith.select %325, %323, %326 : vector<8x128xi1>, vector<8x128xf32>
    %c6_i32_132 = arith.constant 6 : i32
    %328 = vector.broadcast %c6_i32_132 : i32 to vector<1x128xi32>
    %329 = arith.addi %0, %328 : vector<1x128xi32>
    %c0_i32_133 = arith.constant 0 : i32
    %330 = vector.broadcast %c0_i32_133 : i32 to vector<1x128xi32>
    %331 = arith.cmpi sge, %329, %330 : vector<1x128xi32>
    %c6_i32_134 = arith.constant 6 : i32
    %332 = vector.broadcast %c6_i32_134 : i32 to vector<1x128xi32>
    %333 = arith.addi %0, %332 : vector<1x128xi32>
    %c128_i32_135 = arith.constant 128 : i32
    %334 = vector.broadcast %c128_i32_135 : i32 to vector<1x128xi32>
    %335 = arith.cmpi slt, %333, %334 : vector<1x128xi32>
    %336 = arith.andi %331, %335 : vector<1x128xi1>
    %c122_i32 = arith.constant 122 : i32
    %337 = tpu.dynamic_rotate %257 by %c122_i32 dim 1 : vector<8x128xf32>, i32 -> vector<8x128xf32>
    %cst_136 = arith.constant 0.000000e+00 : f32
    %338 = vector.shape_cast %336 : vector<1x128xi1> to vector<1x128xi1>
    %339 = vector.broadcast %338 : vector<1x128xi1> to vector<8x128xi1>
    %340 = vector.broadcast %cst_136 : f32 to vector<8x128xf32>
    %341 = arith.select %339, %337, %340 : vector<8x128xi1>, vector<8x128xf32>
    %342 = tpu.concatenate %271, %285, %299, %257, %313, %327, %341 in 0 : vector<8x128xf32>, vector<8x128xf32>, vector<8x128xf32>, vector<8x128xf32>, vector<8x128xf32>, vector<8x128xf32>, vector<8x128xf32> -> vector<56x128xf32>
    %343 = vector.extract_strided_slice %256 {offsets = [0, 128], sizes = [8, 128], strides = [1, 1]} : vector<8x256xf32> to vector<8x128xf32>
    %c-6_i32_137 = arith.constant -6 : i32
    %344 = vector.broadcast %c-6_i32_137 : i32 to vector<1x128xi32>
    %345 = arith.addi %0, %344 : vector<1x128xi32>
    %c0_i32_138 = arith.constant 0 : i32
    %346 = vector.broadcast %c0_i32_138 : i32 to vector<1x128xi32>
    %347 = arith.cmpi sge, %345, %346 : vector<1x128xi32>
    %c-6_i32_139 = arith.constant -6 : i32
    %348 = vector.broadcast %c-6_i32_139 : i32 to vector<1x128xi32>
    %349 = arith.addi %0, %348 : vector<1x128xi32>
    %c128_i32_140 = arith.constant 128 : i32
    %350 = vector.broadcast %c128_i32_140 : i32 to vector<1x128xi32>
    %351 = arith.cmpi slt, %349, %350 : vector<1x128xi32>
    %352 = arith.andi %347, %351 : vector<1x128xi1>
    %c6_i32_141 = arith.constant 6 : i32
    %353 = tpu.dynamic_rotate %343 by %c6_i32_141 dim 1 : vector<8x128xf32>, i32 -> vector<8x128xf32>
    %cst_142 = arith.constant 0.000000e+00 : f32
    %354 = vector.shape_cast %352 : vector<1x128xi1> to vector<1x128xi1>
    %355 = vector.broadcast %354 : vector<1x128xi1> to vector<8x128xi1>
    %356 = vector.broadcast %cst_142 : f32 to vector<8x128xf32>
    %357 = arith.select %355, %353, %356 : vector<8x128xi1>, vector<8x128xf32>
    %c-4_i32_143 = arith.constant -4 : i32
    %358 = vector.broadcast %c-4_i32_143 : i32 to vector<1x128xi32>
    %359 = arith.addi %0, %358 : vector<1x128xi32>
    %c0_i32_144 = arith.constant 0 : i32
    %360 = vector.broadcast %c0_i32_144 : i32 to vector<1x128xi32>
    %361 = arith.cmpi sge, %359, %360 : vector<1x128xi32>
    %c-4_i32_145 = arith.constant -4 : i32
    %362 = vector.broadcast %c-4_i32_145 : i32 to vector<1x128xi32>
    %363 = arith.addi %0, %362 : vector<1x128xi32>
    %c128_i32_146 = arith.constant 128 : i32
    %364 = vector.broadcast %c128_i32_146 : i32 to vector<1x128xi32>
    %365 = arith.cmpi slt, %363, %364 : vector<1x128xi32>
    %366 = arith.andi %361, %365 : vector<1x128xi1>
    %c4_i32_147 = arith.constant 4 : i32
    %367 = tpu.dynamic_rotate %343 by %c4_i32_147 dim 1 : vector<8x128xf32>, i32 -> vector<8x128xf32>
    %cst_148 = arith.constant 0.000000e+00 : f32
    %368 = vector.shape_cast %366 : vector<1x128xi1> to vector<1x128xi1>
    %369 = vector.broadcast %368 : vector<1x128xi1> to vector<8x128xi1>
    %370 = vector.broadcast %cst_148 : f32 to vector<8x128xf32>
    %371 = arith.select %369, %367, %370 : vector<8x128xi1>, vector<8x128xf32>
    %c-2_i32_149 = arith.constant -2 : i32
    %372 = vector.broadcast %c-2_i32_149 : i32 to vector<1x128xi32>
    %373 = arith.addi %0, %372 : vector<1x128xi32>
    %c0_i32_150 = arith.constant 0 : i32
    %374 = vector.broadcast %c0_i32_150 : i32 to vector<1x128xi32>
    %375 = arith.cmpi sge, %373, %374 : vector<1x128xi32>
    %c-2_i32_151 = arith.constant -2 : i32
    %376 = vector.broadcast %c-2_i32_151 : i32 to vector<1x128xi32>
    %377 = arith.addi %0, %376 : vector<1x128xi32>
    %c128_i32_152 = arith.constant 128 : i32
    %378 = vector.broadcast %c128_i32_152 : i32 to vector<1x128xi32>
    %379 = arith.cmpi slt, %377, %378 : vector<1x128xi32>
    %380 = arith.andi %375, %379 : vector<1x128xi1>
    %c2_i32_153 = arith.constant 2 : i32
    %381 = tpu.dynamic_rotate %343 by %c2_i32_153 dim 1 : vector<8x128xf32>, i32 -> vector<8x128xf32>
    %cst_154 = arith.constant 0.000000e+00 : f32
    %382 = vector.shape_cast %380 : vector<1x128xi1> to vector<1x128xi1>
    %383 = vector.broadcast %382 : vector<1x128xi1> to vector<8x128xi1>
    %384 = vector.broadcast %cst_154 : f32 to vector<8x128xf32>
    %385 = arith.select %383, %381, %384 : vector<8x128xi1>, vector<8x128xf32>
    %c2_i32_155 = arith.constant 2 : i32
    %386 = vector.broadcast %c2_i32_155 : i32 to vector<1x128xi32>
    %387 = arith.addi %0, %386 : vector<1x128xi32>
    %c0_i32_156 = arith.constant 0 : i32
    %388 = vector.broadcast %c0_i32_156 : i32 to vector<1x128xi32>
    %389 = arith.cmpi sge, %387, %388 : vector<1x128xi32>
    %c2_i32_157 = arith.constant 2 : i32
    %390 = vector.broadcast %c2_i32_157 : i32 to vector<1x128xi32>
    %391 = arith.addi %0, %390 : vector<1x128xi32>
    %c128_i32_158 = arith.constant 128 : i32
    %392 = vector.broadcast %c128_i32_158 : i32 to vector<1x128xi32>
    %393 = arith.cmpi slt, %391, %392 : vector<1x128xi32>
    %394 = arith.andi %389, %393 : vector<1x128xi1>
    %c126_i32_159 = arith.constant 126 : i32
    %395 = tpu.dynamic_rotate %343 by %c126_i32_159 dim 1 : vector<8x128xf32>, i32 -> vector<8x128xf32>
    %cst_160 = arith.constant 0.000000e+00 : f32
    %396 = vector.shape_cast %394 : vector<1x128xi1> to vector<1x128xi1>
    %397 = vector.broadcast %396 : vector<1x128xi1> to vector<8x128xi1>
    %398 = vector.broadcast %cst_160 : f32 to vector<8x128xf32>
    %399 = arith.select %397, %395, %398 : vector<8x128xi1>, vector<8x128xf32>
    %c4_i32_161 = arith.constant 4 : i32
    %400 = vector.broadcast %c4_i32_161 : i32 to vector<1x128xi32>
    %401 = arith.addi %0, %400 : vector<1x128xi32>
    %c0_i32_162 = arith.constant 0 : i32
    %402 = vector.broadcast %c0_i32_162 : i32 to vector<1x128xi32>
    %403 = arith.cmpi sge, %401, %402 : vector<1x128xi32>
    %c4_i32_163 = arith.constant 4 : i32
    %404 = vector.broadcast %c4_i32_163 : i32 to vector<1x128xi32>
    %405 = arith.addi %0, %404 : vector<1x128xi32>
    %c128_i32_164 = arith.constant 128 : i32
    %406 = vector.broadcast %c128_i32_164 : i32 to vector<1x128xi32>
    %407 = arith.cmpi slt, %405, %406 : vector<1x128xi32>
    %408 = arith.andi %403, %407 : vector<1x128xi1>
    %c124_i32_165 = arith.constant 124 : i32
    %409 = tpu.dynamic_rotate %343 by %c124_i32_165 dim 1 : vector<8x128xf32>, i32 -> vector<8x128xf32>
    %cst_166 = arith.constant 0.000000e+00 : f32
    %410 = vector.shape_cast %408 : vector<1x128xi1> to vector<1x128xi1>
    %411 = vector.broadcast %410 : vector<1x128xi1> to vector<8x128xi1>
    %412 = vector.broadcast %cst_166 : f32 to vector<8x128xf32>
    %413 = arith.select %411, %409, %412 : vector<8x128xi1>, vector<8x128xf32>
    %c6_i32_167 = arith.constant 6 : i32
    %414 = vector.broadcast %c6_i32_167 : i32 to vector<1x128xi32>
    %415 = arith.addi %0, %414 : vector<1x128xi32>
    %c0_i32_168 = arith.constant 0 : i32
    %416 = vector.broadcast %c0_i32_168 : i32 to vector<1x128xi32>
    %417 = arith.cmpi sge, %415, %416 : vector<1x128xi32>
    %c6_i32_169 = arith.constant 6 : i32
    %418 = vector.broadcast %c6_i32_169 : i32 to vector<1x128xi32>
    %419 = arith.addi %0, %418 : vector<1x128xi32>
    %c128_i32_170 = arith.constant 128 : i32
    %420 = vector.broadcast %c128_i32_170 : i32 to vector<1x128xi32>
    %421 = arith.cmpi slt, %419, %420 : vector<1x128xi32>
    %422 = arith.andi %417, %421 : vector<1x128xi1>
    %c122_i32_171 = arith.constant 122 : i32
    %423 = tpu.dynamic_rotate %343 by %c122_i32_171 dim 1 : vector<8x128xf32>, i32 -> vector<8x128xf32>
    %cst_172 = arith.constant 0.000000e+00 : f32
    %424 = vector.shape_cast %422 : vector<1x128xi1> to vector<1x128xi1>
    %425 = vector.broadcast %424 : vector<1x128xi1> to vector<8x128xi1>
    %426 = vector.broadcast %cst_172 : f32 to vector<8x128xf32>
    %427 = arith.select %425, %423, %426 : vector<8x128xi1>, vector<8x128xf32>
    %428 = tpu.concatenate %357, %371, %385, %343, %399, %413, %427 in 0 : vector<8x128xf32>, vector<8x128xf32>, vector<8x128xf32>, vector<8x128xf32>, vector<8x128xf32>, vector<8x128xf32>, vector<8x128xf32> -> vector<56x128xf32>
    %429 = tpu.concatenate %342, %428 in 1 : vector<56x128xf32>, vector<56x128xf32> -> vector<56x256xf32>
    %c0_173 = arith.constant 0 : index
    %c0_174 = arith.constant 0 : index
    %430 = vector.load %arg6[%c0_173, %c0_174] : memref<8x56xbf16, #tpu.memory_space<vmem>>, vector<8x56xbf16>
    %431 = arith.truncf %429 : vector<56x256xf32> to vector<56x256xbf16>
    %cst_175 = arith.constant dense<0.000000e+00> : vector<8x256xf32>
    %432 = tpu.matmul %430, %431, %cst_175 {dimension_numbers = #tpu.dot_dimension_numbers<[1], [0], [0], [1], [0, 0, 1, 1], [], []>} : vector<8x56xbf16>, vector<56x256xbf16>, vector<8x256xf32> -> vector<8x256xf32>
    %c0_176 = arith.constant 0 : index
    %c0_177 = arith.constant 0 : index
    %433 = vector.load %arg7[%c0_176, %c0_177] : memref<8x1xf32, #tpu.memory_space<vmem>>, vector<8x1xf32>
    %434 = vector.broadcast %433 : vector<8x1xf32> to vector<8x256xf32>
    %435 = arith.addf %432, %434 : vector<8x256xf32>
    %cst_178 = arith.constant 0.000000e+00 : f32
    %436 = vector.broadcast %cst_178 : f32 to vector<8x256xf32>
    %437 = arith.cmpf oge, %435, %436 : vector<8x256xf32>
    %cst_179 = arith.constant 0.00999999977 : f32
    %438 = vector.broadcast %cst_179 : f32 to vector<8x256xf32>
    %439 = arith.mulf %438, %435 : vector<8x256xf32>
    %440 = arith.select %437, %435, %439 : vector<8x256xi1>, vector<8x256xf32>
    %441 = vector.extract_strided_slice %440 {offsets = [0, 0], sizes = [8, 128], strides = [1, 1]} : vector<8x256xf32> to vector<8x128xf32>
    %c0_180 = arith.constant 0 : index
    %c0_181 = arith.constant 0 : index
    %c0_182 = arith.constant 0 : index
    %442 = vector.load %arg8[%c0_180, %c0_181, %c0_182] : memref<2x8x128xf32, #tpu.memory_space<vmem>>, vector<1x8x128xf32>
    %443 = vector.shape_cast %442 : vector<1x8x128xf32> to vector<8x128xf32>
    %444 = vector.shape_cast %441 : vector<8x128xf32> to vector<1x8x128xf32>
    tpu.vector_store %arg8[%c0_180, %c0_181, %c0_182], %444 {strides = array<i32>} : memref<2x8x128xf32, #tpu.memory_space<vmem>>, vector<1x8x128xf32>,
    %445 = vector.extract_strided_slice %440 {offsets = [0, 128], sizes = [8, 128], strides = [1, 1]} : vector<8x256xf32> to vector<8x128xf32>
    %c1_183 = arith.constant 1 : index
    %c0_184 = arith.constant 0 : index
    %c0_185 = arith.constant 0 : index
    %446 = vector.load %arg8[%c1_183, %c0_184, %c0_185] : memref<2x8x128xf32, #tpu.memory_space<vmem>>, vector<1x8x128xf32>
    %447 = vector.shape_cast %446 : vector<1x8x128xf32> to vector<8x128xf32>
    %448 = vector.shape_cast %445 : vector<8x128xf32> to vector<1x8x128xf32>
    tpu.vector_store %arg8[%c1_183, %c0_184, %c0_185], %448 {strides = array<i32>} : memref<2x8x128xf32, #tpu.memory_space<vmem>>, vector<1x8x128xf32>,
    return
  }
  func.func @transform_0(%arg0: i32) -> (i32, i32, i32) {
    %c0_i32 = arith.constant 0 : i32
    %c0_i32_0 = arith.constant 0 : i32
    %c0_i32_1 = arith.constant 0 : i32
    return %arg0, %c0_i32, %c0_i32_0 : i32, i32, i32
  }
  func.func @transform_1(%arg0: i32) -> (i32, i32, i32) {
    %c0_i32 = arith.constant 0 : i32
    %c0_i32_0 = arith.constant 0 : i32
    %c0_i32_1 = arith.constant 0 : i32
    return %arg0, %c0_i32, %c0_i32_0 : i32, i32, i32
  }
  func.func @transform_2(%arg0: i32) -> (i32, i32) {
    %c0_i32 = arith.constant 0 : i32
    %c0_i32_0 = arith.constant 0 : i32
    %c0_i32_1 = arith.constant 0 : i32
    return %c0_i32, %c0_i32_0 : i32, i32
  }
  func.func @transform_3(%arg0: i32) -> (i32, i32) {
    %c0_i32 = arith.constant 0 : i32
    %c0_i32_0 = arith.constant 0 : i32
    %c0_i32_1 = arith.constant 0 : i32
    return %c0_i32, %c0_i32_0 : i32, i32
  }
  func.func @transform_4(%arg0: i32) -> (i32, i32) {
    %c0_i32 = arith.constant 0 : i32
    %c0_i32_0 = arith.constant 0 : i32
    %c0_i32_1 = arith.constant 0 : i32
    return %c0_i32, %c0_i32_0 : i32, i32
  }
  func.func @transform_5(%arg0: i32) -> (i32, i32) {
    %c0_i32 = arith.constant 0 : i32
    %c0_i32_0 = arith.constant 0 : i32
    %c0_i32_1 = arith.constant 0 : i32
    return %c0_i32, %c0_i32_0 : i32, i32
  }
  func.func @transform_6(%arg0: i32) -> (i32, i32) {
    %c0_i32 = arith.constant 0 : i32
    %c0_i32_0 = arith.constant 0 : i32
    %c0_i32_1 = arith.constant 0 : i32
    return %c0_i32, %c0_i32_0 : i32, i32
  }
  func.func @transform_7(%arg0: i32) -> (i32, i32, i32) {
    %c0_i32 = arith.constant 0 : i32
    %c0_i32_0 = arith.constant 0 : i32
    %c0_i32_1 = arith.constant 0 : i32
    return %arg0, %c0_i32, %c0_i32_0 : i32, i32, i32
  }
}

</mosaic_0001>

<bundles_post_ra>
// kernel: tpu_custom_call.1
= control target key start
LH: loop header
LB: loop body
LE: loop exit
PB: predicated region body
PF: predicated region fallthrough
CT: control target
= control target key end

     0   :  { %s1814_s0 = inlined_call_operand.hbm [shape: f32[4,8,64], index: 0, kind: input, shape index: {}]   ;;  %s1815_s1 = inlined_call_operand.hbm [shape: f32[4,8,128], index: 1, kind: input, shape index: {}]   ;;  %s1816_s2 = inlined_call_operand.hbm [shape: bf16[64,128], index: 2, kind: input, shape index: {}]   ;;  %s1817_s3 = inlined_call_operand.vmem [shape: bf16[8,112], index: 3, kind: input, shape index: {}]   ;;  %s1818_s4 = inlined_call_operand.vmem [shape: f32[8,1], index: 4, kind: input, shape index: {}]   ;;  %s1819_s5 = inlined_call_operand.vmem [shape: bf16[8,56], index: 5, kind: input, shape index: {}]   ;;  %s1820_s6 = inlined_call_operand.vmem [shape: f32[8,1], index: 6, kind: input, shape index: {}]   ;;  %s1821_s7 = inlined_call_operand.hbm [shape: f32[4,8,128], index: 7, kind: output, shape index: {}]  }
   0x1   :  { %1827 = sst [smem:[#allocation15_spill]] %s1814_s0 }
   0x2   :  { %1828 = sst [smem:[#allocation16_spill]] %s1816_s2 }
   0x3   :  { %12 = vsyncpa [#allocation3], 0 }
   0x4   :  { %14 = vsyncpa [#allocation3 + $0x1], 0 }
   0x5   :  { %15 = vsyncpa [#allocation6], 0 }
   0x6   :  { %17 = vsyncpa [#allocation6 + $0x1], 0 }
   0x7   :  { %18 = vsyncpa [#allocation4], 0 }
   0x8   :  { %20 = vsyncpa [#allocation4 + $0x1], 0  ;;  %s1447_s24 = smov 0   ;;  %s1449_s25 = smov 0  }
   0x9   :  { %s1451_s26 = smov 0   ;;  %s1453_s27 = smov 0  }
   0xa LB: > { %1829 = sst [smem:[#allocation13_spill]] %s1377_s26  ;;  %s1468_s28 = sadd.s32 4294967295, %s1381_s27   ;;  %s1381_s27 = sphi %s1453_s27, %s1859_s27   ;;  %s1377_s26 = sphi %s1451_s26, %s1856_s26   ;;  %s1373_s25 = sphi %s1449_s25, %s1858_s25   ;;  %s1369_s24 = sphi %s1447_s24, %s1857_s24  }
   0xb   : > { %s919_s29 = sadd.s32 4294967294, %s1381_s27   ;;  %p46_p0 = scmp.ne.s32.totalorder %s1373_s25, %s1369_s24 }
   0xc   : > { %p1822_p1 = scmp.eq.s32.totalorder %s1468_s28, 0  ;;  %p207_p3 = scmp.eq.s32.totalorder %s919_s29, 1 }
   0xd   : > { %p920_p5 = scmp.ge.s32.totalorder %s1381_s27, 1  ;;  %p214_p7 = scmp.lt.s32.totalorder %s1381_s27, 3 }
   0xe   : > { %p1477_p4 = por %p1822_p1, %p46_p0  ;;  %p1482_p6 = por %p207_p3, %p46_p0 }
   0xf   : > { %p1487_p8 = pnand %p920_p5, %p214_p7  ;;  %s1383_s10 = smov [#allocation7]  }
  0x10   : > { %s1830_s30 = scalar_select %p1477_p4, 1, 0 }
  0x11   : > { %s1831_s8 = scalar_select %p1482_p6, 1, 0 }
  0x12   : > { %s1832_s9 = scalar_select %p1487_p8, 1, 0 }
  0x13   : > { %s226_s11 = sshll.u32 %s1383_s10, 4  ;;  %p1052_p9 = pneg %p1487_p8  ;;  %s1491_s11 = int_to_ptr.vmem [resolvable:$true] %s226_s11 }
  0x14   : > { %s1503_s13 = sadd.s32 1, %s1381_s27   ;;  %s33_s14 = sadd.s32 1, %s1377_s26 }
  0x15   : > { %p1498_p11 = pnand %p1052_p9, %p1822_p1  ;;  %s30_s15 = ssub.s32 %s1381_s27, %s1503_s13 }
  0x16   : > { %s1834_s2 = sld [smem:[#allocation16_spill]] }
  0x17   : > { %p1221_p13 = pneg %p1498_p11 }
  0x1c   : > { %s1219_s18 = scalar_lea.hbm %s1834_s2, 512 }
  0x1d   : > { %p1220_p12 = scmp.ne.s32.totalorder %s1834_s2, %s1219_s18  ;;  %p1226_p5 = scmp.lt.u32.totalorder %s1219_s18, %s1834_s2 }
  0x1f   : > { %p1222_p0 = pnand %p1221_p13, %p1220_p12 }
  0x21   : > { %p1223_p3 = pneg %p1222_p0 }
  0x23   : > { %p1228_p7 = pnand %p1226_p5, %p1223_p3 }
  0x25   : > { %1231 = shalt.err (!%p1228_p7)
}
  0x26   : > { %s1232_s23 = scalar_lea.vmem %s1491_s11, 512  ;;  %p1240_p2 = scmp.lt.s32.totalorder %s1491_s11, %s1491_s11 }
  0x27   : > { %p1233_p9 = scmp.ne.s32.totalorder %s1491_s11, %s1232_s23  ;;  %p1241_p6 = scmp.lt.s32.totalorder %s1232_s23, %s1232_s23 }
  0x29   : > { %p1235_p10 = pnand %p1233_p9, %p1221_p13  ;;  %p1242_p4 = por %p1241_p6, %p1240_p2 }
  0x2b   : > { %p1236_p1 = pneg %p1235_p10 }
  0x2d   : > { %p1243_p8 = pnand %p1242_p4, %p1236_p1 }
  0x2f   : > { %1246 = shalt.err (!%p1243_p8)
}
  0x30   : > { %s1384_s29 = smov 64   ;;  %s1385_s10 = smov 4  }
  0x31   : > { %1055 = dma.hbm_to_vmem [thread:$0]  (!%p1498_p11), %s1834_s2, 512, %s1491_s11, [#allocation6], %s1384_s29, %s1384_s29, %s1385_s10  }
  0x32   : > { %p31_p1 = scmp.eq.s32.totalorder %s30_s15, 0  ;;  %p40_p2 = scmp.ne.s32.totalorder %s1377_s26, %s1373_s25 }
  0x33   : > { %p41_p4 = scmp.eq.s32.totalorder %s1381_s27, 0  ;;  %p1068_p6 = scmp.lt.s32.totalorder %s1381_s27, 2 }
  0x34   : > { %s1534_s18 = scalar_select %p31_p1, %s1377_s26, %s33_s14  }
  0x35   : > { %p42_p8 = por %p41_p4, %p40_p2  ;;  %p1836_p10 = scmp.eq.s32.totalorder %s1468_s28, 1 }
  0x36   : > { %1835 = sst [smem:[#allocation14_spill]] %s1534_s18  ;;  %s252_s20 = sand.u32 1, %s1377_s26  }
  0x37   : > { %p1538_p12 = por %p1836_p10, %p40_p2  ;;  %s1825_s21 = sshll.u32 %s1381_s27, 8 }
  0x38   : > { %s1544_s22 = sshll.u32 %s252_s20, 4  ;;  %s1838_s0 = sld [smem:[#allocation15_spill]] }
  0x39   : > { %s256_s14 = scalar_lea.vmem [#allocation2], %s1544_s22  ;;  %p1554_p11 = pnand %p1068_p6, %p42_p8 }
  0x3a   : > { %s263_s15 = sshll.u32 %s256_s14, 4  ;;  %s1560_s10 = scalar_lea.sflag [#allocation3], %s252_s20  ;;  %s1558_s15 = int_to_ptr.vmem [resolvable:$true] %s263_s15 }
  0x3b   : > { %p1249_p0 = pneg %p1554_p11 }
  0x3e   : > { %s1551_s11 = scalar_lea.hbm %s1838_s0, %s1825_s21  ;;  %s1252_s23 = scalar_lea.hbm %s1838_s0, 512 }
  0x3f   : > { %s1247_s16 = scalar_lea.hbm %s1551_s11, 256  ;;  %p1253_p7 = scmp.lt.u32.totalorder %s1551_s11, %s1838_s0 }
  0x40   : > { %p1248_p13 = scmp.ne.s32.totalorder %s1551_s11, %s1247_s16  ;;  %p1254_p9 = scmp.lt.u32.totalorder %s1252_s23, %s1247_s16 }
  0x41   : > { %p1256_p2 = scmp.lt.u32.totalorder %s1247_s16, %s1551_s11 }
  0x42   : > { %p1250_p3 = pnand %p1249_p0, %p1248_p13  ;;  %p1255_p1 = por %p1254_p9, %p1253_p7 }
  0x44   : > { %p1251_p5 = pneg %p1250_p3  ;;  %p1257_p4 = por %p1256_p2, %p1255_p1 }
  0x46   : > { %p1258_p6 = pnand %p1257_p4, %p1251_p5 }
  0x48   : > { %1261 = shalt.err (!%p1258_p6)
}
  0x49   : > { %s1262_s20 = scalar_lea.vmem %s1558_s15, 256  ;;  %s1386_s17 = smov [#allocation2]  }
  0x4a   : > { %p1263_p8 = scmp.ne.s32.totalorder %s1558_s15, %s1262_s20  ;;  %s1267_s12 = sshll.u32 %s1386_s17, 4  ;;  %s1268_s12 = int_to_ptr.vmem [resolvable:$false] %s1267_s12 }
  0x4b   : > { %s1269_s21 = scalar_lea.vmem %s1268_s12, 512  ;;  %p1270_p3 = scmp.lt.s32.totalorder %s1558_s15, %s1268_s12 }
  0x4c   : > { %p1265_p10 = pnand %p1263_p8, %p1249_p0  ;;  %p1271_p7 = scmp.lt.s32.totalorder %s1269_s21, %s1262_s20 }
  0x4e   : > { %p1266_p13 = pneg %p1265_p10  ;;  %p1272_p9 = por %p1271_p7, %p1270_p3 }
  0x50   : > { %p1273_p1 = pnand %p1272_p9, %p1266_p13 }
  0x52   : > { %1276 = shalt.err (!%p1273_p1)
}
  0x53   : > { %s1387_s16 = smov 128   ;;  %s1388_s23 = smov 8  }
  0x54   : > { %1059 = dma.hbm_to_vmem [thread:$0]  (!%p1554_p11), %s1551_s11, 256, %s1558_s15, %s1560_s10, %s1387_s16, %s1387_s16, %s1388_s23  }
  0x55   : > { %s1840_s14 = sshll.u32 %s1381_s27, 8  ;;  %s277_s21 = scalar_lea.vmem [#allocation5], %s1544_s22 }
  0x56   : > { %s1596_s12 = scalar_lea.hbm %s1815_s1, %s1840_s14  ;;  %s284_s0 = sshll.u32 %s277_s21, 4  ;;  %s1600_s0 = int_to_ptr.vmem [resolvable:$true] %s284_s0 }
  0x57   : > { %s273_s2 = sand.u32 1, %s1381_s27   ;;  %s1277_s26 = scalar_lea.hbm %s1596_s12, 256 }
  0x58   : > { %s1602_s18 = scalar_lea.sflag [#allocation6], %s273_s2  ;;  %p1278_p5 = scmp.ne.s32.totalorder %s1596_s12, %s1277_s26 }
  0x59   : > { %s1282_s10 = scalar_lea.hbm %s1815_s1, 512  ;;  %p1283_p6 = scmp.lt.u32.totalorder %s1596_s12, %s1815_s1 }
  0x5a   : > { %p1280_p2 = pnand %p1278_p5, %p1249_p0  ;;  %p1284_p8 = scmp.lt.u32.totalorder %s1282_s10, %s1277_s26 }
  0x5b   : > { %p1286_p13 = scmp.lt.u32.totalorder %s1277_s26, %s1596_s12 }
  0x5c   : > { %p1281_p4 = pneg %p1280_p2  ;;  %p1285_p10 = por %p1284_p8, %p1283_p6 }
  0x5e   : > { %p1287_p3 = por %p1286_p13, %p1285_p10 }
  0x60   : > { %p1288_p7 = pnand %p1287_p3, %p1281_p4 }
  0x62   : > { %1291 = shalt.err (!%p1288_p7)
}
  0x63   : > { %s1292_s2 = scalar_lea.vmem %s1600_s0, 256  ;;  %s1389_s22 = smov [#allocation5]  }
  0x64   : > { %p1293_p9 = scmp.ne.s32.totalorder %s1600_s0, %s1292_s2  ;;  %s1297_s17 = sshll.u32 %s1389_s22, 4  ;;  %s1298_s17 = int_to_ptr.vmem [resolvable:$false] %s1297_s17 }
  0x65   : > { %s1299_s21 = scalar_lea.vmem %s1298_s17, 512  ;;  %p1300_p2 = scmp.lt.s32.totalorder %s1600_s0, %s1298_s17 }
  0x66   : > { %p1295_p1 = pnand %p1293_p9, %p1249_p0  ;;  %p1301_p6 = scmp.lt.s32.totalorder %s1299_s21, %s1292_s2 }
  0x68   : > { %p1296_p5 = pneg %p1295_p1  ;;  %p1302_p8 = por %p1301_p6, %p1300_p2 }
  0x6a   : > { %p1303_p10 = pnand %p1302_p8, %p1296_p5 }
  0x6c   : > { %1306 = shalt.err (!%p1303_p10)
}
  0x6d   : > { %1062 = dma.hbm_to_vmem [thread:$0]  (!%p1554_p11), %s1596_s12, 256, %s1600_s0, %s1602_s18, %s1387_s16, %s1387_s16, %s1388_s23  }
  0x6e   : > { %p1841_p0 = scmp.ne.s32.totalorder %s1832_s9, 0 }
  0x6f   : > { %s1634_s26 = sand.u32 (!%p1841_p0), 1, %s1373_s25   ;;  %p1842_p4 = scmp.ne.s32.totalorder (!%p1841_p0), %s1830_s30, 0 }
  0x70   : > { %296 = sbr.rel (%p1841_p0) target bundleno = 1100 (0x44c), region = 48  ;;  %s1637_s11 = sshll.u32 (!%p1841_p0), %s1634_s26, 4 }
  0x71   : > { %s299_s29 = scalar_lea.sflag (!%p1841_p0), [#allocation3], %s1634_s26  ;;  %s302_s15 = scalar_lea.vmem (!%p1841_p0), [#allocation2], %s1637_s11 }
  0x77   : > { %1352 = dma.done.wait (%p1842_p4), %s299_s29, 256  }
  0x78   : > { %1354 = vsyncadd (%p1842_p4), %s299_s29, 4294967040  ;;  %s307_s0 = sand.u32 1, %s1468_s28   ;;  %s311_s18 = scalar_lea.vmem [#allocation5], %s1637_s11 }
  0x79   : > { %s308_s9 = scalar_lea.sflag [#allocation6], %s307_s0 }
  0x7a   : > { %1356 = dma.done.wait (%p1842_p4), %s308_s9, 256  }
  0x7b   : > { %1358 = vsyncadd (%p1842_p4), %s308_s9, 4294967040  ;;  %p1843_p11 = scmp.eq.s32.totalorder %s1468_s28, 0 }
  0x7d   : > { %1360 = dma.done.wait (%p1843_p11), [#allocation6], 512   ;;  %p1844_p13 = pmov %p1843_p11 }
  0x7e   : > { %v1390_v0 = vmov 0.0   ;;  %vm1391_vm0 = vmmov 0   ;;  %v1215_v1 = vld [vmem:[#allocation7] sm:$0xff]   ;;  %v1216_v2 = vld [vmem:[#allocation7 + $0x8] sm:$0xff]   ;;  %v1217_v3 = vld [vmem:[#allocation7 + $0x10] sm:$0xff]   ;;  %vm391_vm1 = vcmask 523264   ;;  %v355_v25 = vlaneseq }
  0x7f   : > { %1362 = vsyncadd (%p1844_p13), [#allocation6], 4294966784  ;;  %1030 = vmatprep.subr.bf16.mxu1 %v1390_v0  ;;  %1018 = vmatprep.subr.bf16.mxu0 %v1390_v0  ;;  %v1218_v4 = vld [vmem:[#allocation7 + $0x18] sm:$0xff]   ;;  %v357_v6 = vld [vmem:[%s302_s15] sm:$0xff]  ;;  %s1392_s30 = smov 2   ;;  %s1393_s16 = smov 3  }
  0x80   : > { %1038 = vmatprep.mubr.msk.bf16.mxu1 %vm1391_vm0, %v1390_v0  ;;  %1026 = vmatprep.mubr.msk.bf16.mxu0 %vm1391_vm0, %v1390_v0  ;;  %v939_v5 = vld [vmem:[%s302_s15 + $0x8] sm:$0xff]  ;;  %v358_v8 = vpack.c.bf16 %v357_v6, %v357_v6  ;;  %v1669_v12 = vld [vmem:[%s311_s18] sm:$0xff]  ;;  %s1394_s23 = smov 1   ;;  %s1395_s12 = smov 127   ;;  %v1398_v23 = vmov 0   ;;  %v1686_v26 = vand.u32 127, %v355_v25 }
  0x81   : > { %1031 = vmatpush3.bf16.msra.mxu1 %v1215_v1  ;;  %1019 = vmatpush3.bf16.msra.mxu0 %v1215_v1  ;;  %v510_v7 = vpack.c.bf16 %v939_v5, %v939_v5  ;;  %v1661_v9 = vld [vmem:[%s311_s18 + $0x8] sm:$0xff]  ;;  %s1396_s10 = smov 126   ;;  %s1397_s14 = smov 125   ;;  %v607_v24 = vld [vmem:[%s1818_s4] sm:$0xff]  ;;  %vm613_vm14 = vcmask 916480  }
  0x82   : > { %1032 = vmatprep.subr.bf16.mxu1 %v1390_v0  ;;  %1020 = vmatprep.subr.bf16.mxu0 %v1390_v0  ;;  %v436_v27 = vadd.s32 4294967293, %v1686_v26  ;;  %v1690_v30 = vadd.s32 4294967294, %v1686_v26  ;;  %v460_v39 = vadd.s32 4294967295, %v1686_v26  ;;  %v472_v57 = vadd.s32 1, %v1686_v26  ;;  %s1399_s21 = smov 6   ;;  %s1400_s29 = smov 124  }
  0x83   : > { %1184 = vset.pattern.permute.xlu0 %v1398_v23  ;;  %v1715_v59 = vadd.s32 2, %v1686_v26  ;;  %v496_v6 = vadd.s32 3, %v1686_v26  ;;  %s1401_s15 = smov 4   ;;  %s1402_s18 = smov 122  }
  0x84   : > { %vm437_vm2 = vcmp.ge.s32.totalorder %v436_v27, 0  ;;  %vm449_vm4 = vcmp.ge.s32.totalorder %v1690_v30, 0  ;;  %vm461_vm6 = vcmp.ge.s32.totalorder %v460_v39, 0  ;;  %vm474_vm8 = vcmp.lt.s32.totalorder %v472_v57, 128  ;;  %s1404_s22 = smov [#allocation8]  }
  0x85   : > { %1033 = vmatpush3.bf16.msra.mxu1 %v1216_v2  ;;  %1021 = vmatpush3.bf16.msra.mxu0 %v1216_v2  ;;  %vm1692_vm3 = vmpackc.low %vm437_vm2, %vm437_vm2  ;;  %vm486_vm10 = vcmp.lt.s32.totalorder %v1715_v59, 128  ;;  %vm498_vm12 = vcmp.lt.s32.totalorder %v496_v6, 128  ;;  %s1311_s17 = sshll.u32 %s1404_s22, 4  ;;  %s1312_s17 = int_to_ptr.vmem [resolvable:$false] %s1311_s17 }
  0x86   : > { %1034 = vmatprep.subr.bf16.mxu1 %v1390_v0  ;;  %1022 = vmatprep.subr.bf16.mxu0 %v1390_v0  ;;  %vm1703_vm5 = vmpackc.low %vm449_vm4, %vm449_vm4 }
  0x87   : > { %vm954_vm7 = vmpackc.low %vm461_vm6, %vm461_vm6 }
  0x88   : > { %vm1720_vm9 = vmpackc.low %vm474_vm8, %vm474_vm8 }
  0x89   : > { %1035 = vmatpush3.bf16.msra.mxu1 %v1217_v3  ;;  %1023 = vmatpush3.bf16.msra.mxu0 %v1217_v3  ;;  %vm966_vm11 = vmpackc.low %vm486_vm10, %vm486_vm10 }
  0x8a   : > { %1036 = vmatprep.subr.bf16.mxu1 %v1390_v0  ;;  %1024 = vmatprep.subr.bf16.mxu0 %v1390_v0  ;;  %vm972_vm13 = vmpackc.low %vm498_vm12, %vm498_vm12 }
  0x8d   : > { %1037 = vmatpush3.bf16.msra.mxu1 %v1218_v4  ;;  %1025 = vmatpush3.bf16.msra.mxu0 %v1218_v4 }
  0x90   : > { %1039 = vmatmul.mubr.msk.bf16.vlgmr.msra.gmra.mrb[0].mxu1 %vm391_vm1, %v510_v7  ;;  %1027 = vmatmul.mubr.msk.bf16.vlgmr.msra.gmra.mrb[0].mxu0 %vm391_vm1, %v358_v8 }
  0x91   : > { %649 = vmatprep.mubr.bf16.mxu0 %v1398_v23  ;;  %782 = vmatprep.mubr.bf16.mxu1 %v1398_v23 }
 0x163   : > { %v1663_v10 = vpop.f32.mrb[0].mxu1  ;;  %v1665_v11 = vpop.f32.mrb[0].mxu0 }
 0x164   : > { %v1040_v13 = vpop.f32.mrb[1].mxu1  ;;  %v1028_v14 = vpop.f32.mrb[1].mxu0  ;;  %v1134_v15 = vpack.i.bf16 %v1661_v9, %v1663_v10  ;;  %v1139_v20 = vpack.i.bf16 %v1669_v12, %v1665_v11  ;;  %v600_v21 = vpack.c.bf16 %v1661_v9, %v1663_v10  ;;  %v599_v22 = vpack.c.bf16 %v1669_v12, %v1665_v11 }
 0x165   : > { %v551_v16 = vpop.f32.mrb[2].mxu1  ;;  %v432_v17 = vpop.f32.mrb[2].mxu0 }
 0x166   : > { %1135 = vrot.lane.b32.xlu1 %v1134_v15, %s1392_s30  ;;  %1125 = vrot.lane.b32.xlu0 %v1134_v15, %s1393_s16  ;;  %v1041_v18 = vpop.f32.mrb[3].mxu1  ;;  %v1029_v19 = vpop.f32.mrb[3].mxu0 }
 0x16a   : > { %1140 = vrot.lane.b32.xlu1 %v1139_v20, %s1392_s30  ;;  %1130 = vrot.lane.b32.xlu0 %v1139_v20, %s1393_s16 }
 0x16e   : > { %1150 = vrot.lane.b32.xlu1 %v1139_v20, %s1394_s23  ;;  %1145 = vrot.lane.b32.xlu0 %v1134_v15, %s1394_s23  ;;  %s350_s23 = scalar_lea.vmem [#allocation8], %s1637_s11 }
 0x172   : > { %1160 = vrot.lane.b32.xlu1 %v1139_v20, %s1395_s12  ;;  %1155 = vrot.lane.b32.xlu0 %v1134_v15, %s1395_s12  ;;  %s814_s12 = sshll.u32 %s350_s23, 4  ;;  %s1765_s12 = int_to_ptr.vmem [resolvable:$true] %s814_s12 }
 0x173   : > { %s1307_s2 = scalar_lea.vmem %s1765_s12, 256  ;;  %p1314_p1 = scmp.lt.s32.totalorder %s1765_s12, %s1312_s17 }
 0x174   : > { %p1308_p3 = scmp.ne.s32.totalorder %s1765_s12, %s1307_s2 }
 0x176   : > { %1170 = vrot.lane.b32.xlu1 %v1139_v20, %s1396_s10  ;;  %1165 = vrot.lane.b32.xlu0 %v1134_v15, %s1396_s10  ;;  %p1309_p7 = pnand %p1308_p3, %p1538_p12 }
 0x178   : > { %p1310_p9 = pneg %p1309_p7 }
 0x17a   : > { %1180 = vrot.lane.b32.xlu1 %v1139_v20, %s1397_s14  ;;  %1175 = vrot.lane.b32.xlu0 %v1134_v15, %s1397_s14  ;;  %v592_v20 = vld [vmem:[%s1817_s3] sm:$0xf] }
 0x17e   : > { %610 = vperm.xlu0 %1184, %v607_v24  }
 0x1d8   : > { %v1136_v28 = vpop.permute.xlu1 %1135  ;;  %v1126_v29 = vpop.permute.xlu0 %1125 }
 0x1d9   : > { %v1128_v31 = vunpack.i.h.bf16 %v1126_v29  ;;  %v1127_v32 = vunpack.i.l.bf16 %v1126_v29  ;;  %v1138_v35 = vunpack.i.h.bf16 %v1136_v28  ;;  %v1137_v36 = vunpack.i.l.bf16 %v1136_v28 }
 0x1db   : > { %v943_v34 = vpack.c.bf16 %v1128_v31, %v1127_v32  ;;  %v949_v46 = vpack.c.bf16 %v1138_v35, %v1137_v36  ;;  %v733_v35 = vld [vmem:[%s1820_s6] sm:$0xff] }
 0x1dc   : > { %v1141_v37 = vpop.permute.xlu1 %1140  ;;  %v1131_v38 = vpop.permute.xlu0 %1130 }
 0x1dd   : > { %v1133_v40 = vunpack.i.h.bf16 %v1131_v38  ;;  %v1132_v41 = vunpack.i.l.bf16 %v1131_v38  ;;  %944 = vmatprep.subr.msk.bf16.mxu0 %vm1692_vm3, %v943_v34  ;;  %v1143_v42 = vunpack.i.h.bf16 %v1141_v37  ;;  %v1142_v43 = vunpack.i.l.bf16 %v1141_v37 }
 0x1de   : > { %v664_v37 = vadd.s32 4294967290, %v1686_v26  ;;  %v673_v38 = vadd.s32 4294967292, %v1686_v26 }
 0x1df   : > { %v946_v44 = vpack.c.bf16 %v1133_v40, %v1132_v41  ;;  %v952_v51 = vpack.c.bf16 %v1143_v42, %v1142_v43  ;;  %v688_v43 = vadd.s32 4, %v1686_v26 }
 0x1e0   : > { %v1151_v47 = vpop.permute.xlu1 %1150  ;;  %v1146_v48 = vpop.permute.xlu0 %1145  ;;  %vm665_vm1 = vcmp.ge.s32.totalorder %v664_v37, 0  ;;  %vm674_vm2 = vcmp.ge.s32.totalorder %v673_v38, 0 }
 0x1e1   : > { %v1148_v49 = vunpack.i.h.bf16 %v1146_v48  ;;  %v1147_v50 = vunpack.i.l.bf16 %v1146_v48  ;;  %947 = vmatpush1.bf16.msk.msra.mxu0 %vm1692_vm3, %v946_v44  ;;  %v1153_v52 = vunpack.i.h.bf16 %v1151_v47  ;;  %v1152_v53 = vunpack.i.l.bf16 %v1151_v47  ;;  %vm979_vm3 = vmpackc.low %vm674_vm2, %vm665_vm1 }
 0x1e2   : > { %950 = vmatprep.subr.msk.bf16.mxu0 %vm1703_vm5, %v949_v46 }
 0x1e3   : > { %v955_v54 = vpack.c.bf16 %v1148_v49, %v1147_v50  ;;  %v958_v58 = vpack.c.bf16 %v1153_v52, %v1152_v53 }
 0x1e4   : > { %v1161_v55 = vpop.permute.xlu1 %1160  ;;  %v1156_v56 = vpop.permute.xlu0 %1155 }
 0x1e5   : > { %953 = vmatpush1.bf16.msk.msra.mxu0 %vm1703_vm5, %v952_v51  ;;  %v1158_v60 = vunpack.i.h.bf16 %v1156_v56  ;;  %v1157_v61 = vunpack.i.l.bf16 %v1156_v56  ;;  %v1163_v0 = vunpack.i.h.bf16 %v1161_v55  ;;  %v1162_v1 = vunpack.i.l.bf16 %v1161_v55 }
 0x1e6   : > { %956 = vmatprep.subr.msk.bf16.mxu0 %vm954_vm7, %v955_v54  ;;  %vm1403_vm5 = vmmov 1   ;;  %v697_v54 = vadd.s32 6, %v1686_v26 }
 0x1e7   : > { %v961_v3 = vpack.c.bf16 %v1158_v60, %v1157_v61  ;;  %v964_v8 = vpack.c.bf16 %v1163_v0, %v1162_v1  ;;  %vm1749_vm6 = vmpackc.low %vm1403_vm5, %vm449_vm4 }
 0x1e8   : > { %v1166_v62 = vpop.permute.xlu0 %1165  ;;  %v1171_v63 = vpop.permute.xlu1 %1170  ;;  %vm699_vm8 = vcmp.lt.s32.totalorder %v697_v54, 128 }
 0x1e9   : > { %959 = vmatpush1.bf16.msk.msra.mxu0 %vm954_vm7, %v958_v58  ;;  %v1168_v4 = vunpack.i.h.bf16 %v1166_v62  ;;  %v1167_v5 = vunpack.i.l.bf16 %v1166_v62  ;;  %v1173_v9 = vunpack.i.h.bf16 %v1171_v63  ;;  %v1172_v10 = vunpack.i.l.bf16 %v1171_v63 }
 0x1ea   : > { %623 = vmatprep.subr.bf16.mxu0 %v600_v21  ;;  %vm690_vm7 = vcmp.lt.s32.totalorder %v688_v43, 128 }
 0x1eb   : > { %v967_v13 = vpack.c.bf16 %v1168_v4, %v1167_v5  ;;  %v970_v11 = vpack.c.bf16 %v1173_v9, %v1172_v10  ;;  %vm991_vm4 = vmpackc.low %vm690_vm7, %vm486_vm10  ;;  %v724_v5 = vld [vmem:[%s1819_s5] sm:$0xf]  ;;  %vm739_vm10 = vcmask 457728  }
 0x1ec   : > { %v1176_v7 = vpop.permute.xlu0 %1175  ;;  %v1181_v14 = vpop.permute.xlu1 %1180 }
 0x1ed   : > { %624 = vmatpush1.bf16.msra.mxu0 %v599_v22  ;;  %v1178_v15 = vunpack.i.h.bf16 %v1176_v7  ;;  %v1177_v16 = vunpack.i.l.bf16 %v1176_v7  ;;  %v1183_v12 = vunpack.i.h.bf16 %v1181_v14  ;;  %v1182_v17 = vunpack.i.l.bf16 %v1181_v14 }
 0x1ee   : > { %962 = vmatprep.subr.msk.bf16.mxu0 %vm1720_vm9, %v961_v3 }
 0x1ef   : > { %v973_v18 = vpack.c.bf16 %v1178_v15, %v1177_v16  ;;  %v976_v19 = vpack.c.bf16 %v1183_v12, %v1182_v17 }
 0x1f1   : > { %965 = vmatpush1.bf16.msk.msra.mxu0 %vm1720_vm9, %v964_v8  ;;  %vm743_vm9 = vcmask 1043456  }
 0x1f2   : > { %968 = vmatprep.subr.msk.bf16.mxu0 %vm966_vm11, %v967_v13 }
 0x1f5   : > { %971 = vmatpush1.bf16.msk.msra.mxu0 %vm966_vm11, %v970_v11 }
 0x1f6   : > { %974 = vmatprep.subr.msk.bf16.mxu0 %vm972_vm13, %v973_v18 }
 0x1f9   : > { %977 = vmatpush1.bf16.msk.msra.mxu0 %vm972_vm13, %v976_v19 }
 0x1fc   : > { %978 = vmatmul.mubr.msk.bf16.vlgmr.msra.gmra.mrb[4].mxu0 %vm613_vm14, %v592_v20 }
 0x1fd   : > { %v611_v21 = vpop.permute.xlu0 %610 }
 0x2cf   : > { %v651_v22 = vpop.f32.mrb[4].mxu0 }
 0x2d0   : > { %v652_v23 = vadd.f32 %v651_v22, %v611_v21  ;;  %v653_v24 = vpop.f32.mrb[5].mxu0 }
 0x2d1   : > { %v654_v25 = vadd.f32 %v653_v24, %v611_v21  ;;  %v655_v27 = vpop.f32.mrb[6].mxu0 }
 0x2d2   : > { %vm658_vm15 = vcmp.ge.f32.partialorder %v652_v23, 0.0  ;;  %v660_v28 = vmul.f32 0.01, %v652_v23  ;;  %v656_v29 = vpop.f32.mrb[7].mxu0 }
 0x2d3   : > { %vm659_vm0 = vcmp.ge.f32.partialorder %v654_v25, 0.0  ;;  %v661_v31 = vmul.f32 0.01, %v654_v25 }
 0x2d4   : > { %v662_v32 = vsel %vm658_vm15, %v652_v23, %v660_v28 }
 0x2d5   : > { %v663_v33 = vsel %vm659_vm0, %v654_v25, %v661_v31 }
 0x2d6   : > { %v1195_v34 = vpack.i.bf16 %v662_v32, %v663_v33  ;;  %v1210_v36 = vpack.i.bf16 %v663_v33, %v662_v32 }
 0x2d8   : > { %1196 = vrot.lane.b32.xlu0 %v1195_v34, %s1392_s30  ;;  %1186 = vrot.lane.b32.xlu1 %v1195_v34, %s1399_s21  ;;  %s1313_s21 = scalar_lea.vmem %s1312_s17, 512 }
 0x2d9   : > { %p1315_p5 = scmp.lt.s32.totalorder %s1313_s21, %s1307_s2 }
 0x2db   : > { %p1316_p2 = por %p1315_p5, %p1314_p1 }
 0x2dc   : > { %1206 = vrot.lane.b32.xlu0 %v1195_v34, %s1400_s29  ;;  %1191 = vrot.lane.b32.xlu1 %v1195_v34, %s1401_s15 }
 0x2dd   : > { %p1317_p6 = pnand %p1316_p2, %p1310_p9 }
 0x2e0   : > { %736 = vperm.xlu0 %1184, %v733_v35   ;;  %1201 = vrot.lane.b32.xlu1 %v1195_v34, %s1396_s10  ;;  %s1007_s10 = sshll.u32 %s1468_s28, 8  ;;  %s801_s28 = scalar_lea.sflag [#allocation4], %s1634_s26 }
 0x2e1   : > { %s1770_s20 = scalar_lea.hbm %s1821_s7, %s1007_s10 }
 0x2e4   : > { %1211 = vrot.lane.b32.xlu1 %v1210_v36, %s1402_s18 }
 0x34a   : > { %v1187_v39 = vpop.permute.xlu1 %1186  ;;  %v1197_v40 = vpop.permute.xlu0 %1196 }
 0x34b   : > { %v1198_v41 = vunpack.i.l.bf16 %v1197_v40  ;;  %v1189_v44 = vunpack.i.h.bf16 %v1187_v39  ;;  %v1188_v45 = vunpack.i.l.bf16 %v1187_v39  ;;  %v1199_v50 = vunpack.i.h.bf16 %v1197_v40 }
 0x34d   : > { %v986_v55 = vpack.c.bf16 %v663_v33, %v1198_v41  ;;  %v989_v58 = vpack.c.bf16 %v662_v32, %v1199_v50 }
 0x34e   : > { %v1192_v42 = vpop.permute.xlu1 %1191  ;;  %v1207_v51 = vpop.permute.xlu0 %1206 }
 0x34f   : > { %v1194_v46 = vunpack.i.h.bf16 %v1192_v42  ;;  %v1193_v47 = vunpack.i.l.bf16 %v1192_v42  ;;  %v1208_v57 = vunpack.i.l.bf16 %v1207_v51  ;;  %v1209_v26 = vunpack.i.h.bf16 %v1207_v51 }
 0x351   : > { %v980_v48 = vpack.c.bf16 %v1193_v47, %v1188_v45  ;;  %v983_v49 = vpack.c.bf16 %v1194_v46, %v1189_v44 }
 0x352   : > { %v1202_v52 = vpop.permute.xlu1 %1201 }
 0x353   : > { %v1203_v56 = vunpack.i.l.bf16 %v1202_v52  ;;  %981 = vmatprep.subr.msk.bf16.mxu1 %vm979_vm3, %v980_v48  ;;  %v1204_v60 = vunpack.i.h.bf16 %v1202_v52 }
 0x354   : > { %984 = vmatpush1.bf16.msk.msra.mxu1 %vm979_vm3, %v983_v49 }
 0x355   : > { %987 = vmatprep.subr.msk.bf16.mxu1 %vm1749_vm6, %v986_v55  ;;  %v992_v30 = vpack.c.bf16 %v1208_v57, %v1203_v56  ;;  %v995_v2 = vpack.c.bf16 %v1209_v26, %v1204_v60 }
 0x356   : > { %v1212_v61 = vpop.permute.xlu1 %1211 }
 0x357   : > { %v1214_v62 = vunpack.i.h.bf16 %v1212_v61  ;;  %v1213_v63 = vunpack.i.l.bf16 %v1212_v61 }
 0x358   : > { %990 = vmatpush1.bf16.msk.msra.mxu1 %vm1749_vm6, %v989_v58 }
 0x359   : > { %v723_v0 = vsel %vm699_vm8, %v1214_v62, 0.0  ;;  %v705_v1 = vsel %vm699_vm8, %v1213_v63, 0.0  ;;  %993 = vmatprep.subr.msk.bf16.mxu1 %vm991_vm4, %v992_v30 }
 0x35a   : > { %v732_v3 = vpack.c.bf16 %v723_v0, %v723_v0  ;;  %v731_v4 = vpack.c.bf16 %v705_v1, %v705_v1 }
 0x35c   : > { %996 = vmatpush1.bf16.msk.msra.mxu1 %vm991_vm4, %v995_v2  ;;  %v745_v59 = vsel %vm743_vm9, %v731_v4, 0 }
 0x35d   : > { %997 = vmatprep.subr.msk.bf16.mxu1 %vm743_vm9, %v732_v3 }
 0x35f   : > { %v737_v6 = vpop.permute.xlu0 %736 }
 0x360   : > { %757 = vmatpush1.bf16.msra.mxu1 %v745_v59 }
 0x363   : > { %998 = vmatmul.mubr.msk.bf16.vlgmr.msra.gmra.mrb[4].mxu1 %vm739_vm10, %v724_v5 }
 0x436   : > { %v784_v7 = vpop.f32.mrb[4].mxu1 }
 0x437   : > { %v785_v8 = vadd.f32 %v784_v7, %v737_v6  ;;  %v786_v9 = vpop.f32.mrb[5].mxu1 }
 0x438   : > { %v787_v10 = vadd.f32 %v786_v9, %v737_v6  ;;  %v788_v13 = vpop.f32.mrb[6].mxu1 }
 0x439   : > { %vm791_vm11 = vcmp.ge.f32.partialorder %v785_v8, 0.0  ;;  %v793_v14 = vmul.f32 0.01, %v785_v8  ;;  %v789_v15 = vpop.f32.mrb[7].mxu1 }
 0x43a   : > { %vm792_vm12 = vcmp.ge.f32.partialorder %v787_v10, 0.0  ;;  %v794_v16 = vmul.f32 0.01, %v787_v10 }
 0x43b   : > { %v795_v11 = vsel %vm791_vm11, %v785_v8, %v793_v14 }
 0x43c   : > { %797 = vst [vmem:[%s350_s23] sm:$0xff] %v795_v11  ;;  %v796_v12 = vsel %vm792_vm12, %v787_v10, %v794_v16 }
 0x43d   : > { %999 = vst [vmem:[%s350_s23 + $0x8] sm:$0xff] %v796_v12 }
 0x43e   : > { %1320 = shalt.err (!%p1317_p6)
}
 0x43f   : > { %s1321_s29 = scalar_lea.hbm %s1770_s20, 256  ;;  %s1325_s9 = scalar_lea.hbm %s1821_s7, 512 }
 0x440   : > { %p1322_p8 = scmp.ne.s32.totalorder %s1770_s20, %s1321_s29  ;;  %p1326_p4 = scmp.lt.u32.totalorder %s1770_s20, %s1821_s7 }
 0x441   : > { %p1327_p11 = scmp.lt.u32.totalorder %s1325_s9, %s1321_s29  ;;  %p1329_p3 = scmp.lt.u32.totalorder %s1321_s29, %s1770_s20 }
 0x442   : > { %p1323_p10 = pnand %p1322_p8, %p1538_p12 }
 0x443   : > { %p1328_p13 = por %p1327_p11, %p1326_p4 }
 0x444   : > { %p1324_p0 = pneg %p1323_p10 }
 0x445   : > { %p1330_p7 = por %p1329_p3, %p1328_p13 }
 0x447   : > { %p1331_p9 = pnand %p1330_p7, %p1324_p0 }
 0x449   : > { %1334 = shalt.err (!%p1331_p9)
}
 0x44a   : > { %s1405_s16 = smov 128   ;;  %s1406_s23 = smov 8  }
 0x44b   : > { %1050 = dma.vmem_to_hbm [thread:$0]  (%p1538_p12), %s1765_s12, 256, %s1770_s20, %s801_s28, %s1405_s16, %s1405_s16, %s1406_s23  }
 0x44c PF: > { %s829_s10 = sand.u32 1, %s1369_s24   ;;  %p1853_p1 = scmp.ne.s32.totalorder %s1831_s8, 0 }
 0x44d   : > { %p1854_p5 = scmp.ge.s32.totalorder %s1381_s27, 2  ;;  %s830_s11 = scalar_lea.sflag [#allocation4], %s829_s10 }
 0x44f   : > { %p1064_p2 = pnand %p1854_p5, %p1853_p1 }
 0x451   : > { %1364 = dma.done.wait (!%p1064_p2), %s830_s11, 256  }
 0x452   : > { %1366 = vsyncadd (!%p1064_p2), %s830_s11, 4294967040  ;;  %s1855_s14 = sld [smem:[#allocation13_spill]]  ;;  %s1856_s26 = sld [smem:[#allocation14_spill]] }
 0x453   : > { %p23_p6 = scmp.ge.s32.totalorder %s1503_s13, 4   ;;  %s1857_s24 = smov %s1373_s25 }
 0x454   : > { %s1859_s27 = smov %s1503_s13 }
 0x455   :  { %25 = sbr.rel (!%p23_p6) target bundleno = 10 (0xa), region = 113 }
 0x458   : > { %s1858_s25 = smov %s1855_s14 }
 0x45c   :  { %835 = vsyncpa [#allocation3], 1 }
 0x45d   :  { %837 = vsyncpa [#allocation3 + $0x1], 1 }
 0x45e   :  { %838 = vsyncpa [#allocation6], 1 }
 0x45f   :  { %840 = vsyncpa [#allocation6 + $0x1], 1 }
 0x460   :  { %841 = vsyncpa [#allocation4], 1 }
 0x461   :  { %843 = vsyncpa [#allocation4 + $0x1], 1 }

</bundles_post_ra>
